<compile_context>
chip_gen: v7x
topology: tpu7x:2x2x1
jax: 0.10.0
libtpu: 0.0.40
codegen_flags: <defaults>
</compile_context>

<pallas_src>
import functools

import jax
import jax.numpy as jnp
from jax.experimental import pallas as pl
from jax.experimental.pallas import tpu as pltpu


def _largevis_kernel(minp_ref, rq_ref, cq_ref, a_ref, b_ref, p_ref, out_ref,
                     *, pos_times, neg_times, gamma):
    # Row tile of logits, pre-scaled by -0.5 so that
    #   q = 1 + 0.25 * D2 = (-0.5) * <a_i, b_j> + (0.25*||a_i||^2 + 1) + 0.25*||b_j||^2
    a = a_ref[...] * jnp.float32(-0.5)            # (TM, D)
    b = b_ref[...]                                # (TN, D)

    q = (jnp.dot(a, b.T, preferred_element_type=jnp.float32)
         + rq_ref[...] + cq_ref[...])             # (TM,1)+(1,TN) broadcast -> (TM,TN)

    # p = 1 / (1 + 0.25 * D2) via approximate EUP reciprocal; the clamps below
    # absorb the approximation error at the clamp boundaries.
    p_d2 = pl.reciprocal(q, approx=True)

    minp = minp_ref[0]                            # scalar min(P) from SMEM
    pos_mask = p_ref[...] > minp                  # pos_P; neg_P = ~pos_mask

    # Reference clamps, rewritten with one shared lower clip:
    #   pos:  clip(p, 1e-12, 1-1e-12)
    #   neg:  1 - clip(p, 1e-12, 0.99) == max(1 - max(p,1e-12), 0.01)
    p_lo = jnp.maximum(p_d2, jnp.float32(1e-12))
    pos_arg = jnp.minimum(p_lo, jnp.float32(1.0 - 1e-12))
    neg_arg = jnp.maximum(1.0 - p_lo, jnp.float32(0.01))

    # Single log: select the log argument and the weight with the mask first.
    log_arg = jnp.where(pos_mask, pos_arg, neg_arg)
    weight = jnp.where(pos_mask,
                       jnp.float32(pos_times),
                       jnp.float32(gamma * neg_times))
    contrib = weight * jnp.log(log_arg)           # (TM, TN)

    # Fold (TM, TN) -> (8, 128) with aligned-slice VPU adds only (no cross-lane
    # XLU reduce, lane-dense store).  Final scalar reduce happens in the wrapper.
    tm, tn = contrib.shape
    acc8 = contrib[0:8, :]
    for r in range(8, tm, 8):
        acc8 = acc8 + contrib[r:r + 8, :]         # (8, TN)
    acc = acc8[:, 0:128]
    for c in range(128, tn, 128):
        acc = acc + acc8[:, c:c + 128]            # (8, 128)

    out_ref[...] = acc.reshape(1, 1, 8, 128)


def largevis_loss(logits, P, *, pos_times=20.0, neg_times=1.0,
                  gamma=7.0, tm=128, tn=512):
    """Pallas TPU implementation of LargeVisLoss.forward(logits, P)."""
    N, D = logits.shape
    assert P.shape == (N, N)
    tm = min(tm, N)
    tn = min(tn, N)
    assert N % tm == 0 and N % tn == 0, "N must be divisible by the tile sizes"
    assert tm % 8 == 0, "row tile must be a multiple of 8 (sublanes)"
    assert tn % 128 == 0, "column tile must be a multiple of 128 (lanes)"
    ni, nj = N // tm, N // tn

    logits = logits.astype(jnp.float32)
    P = P.astype(jnp.float32)

    # Tiny glue ops (hoisted out of the grid): global min(P) and the affine
    # pieces of 1 + 0.25 * D2 (the "+1" is folded into the row vector).
    minp = jnp.min(P).reshape((1,))
    sum_x = jnp.sum(logits * logits, axis=1)              # (N,)
    row_q = (0.25 * sum_x + 1.0).reshape(N, 1)            # sliced per row tile
    col_q = (0.25 * sum_x).reshape(1, N)                  # sliced per column tile

    kernel = functools.partial(
        _largevis_kernel,
        pos_times=float(pos_times),
        neg_times=float(neg_times),
        gamma=float(gamma),
    )

    # Explicit VMEM budget only when tiles are big enough to exceed the
    # default scoped limit (matters on v5e where the default is 16 MiB).
    est_vmem = 4 * (2 * tm * tn          # double-buffered P tile
                    + 2 * tm * D         # logits row tile
                    + 2 * tn * D         # logits column tile
                    + 2 * (tm + tn)      # hoisted affine norms
                    + 2 * 8 * 128)       # output block
    compiler_kwargs = dict(dimension_semantics=("parallel", "parallel"))
    if est_vmem > (12 << 20):
        compiler_kwargs["vmem_limit_bytes"] = min(4 * est_vmem, 64 << 20)

    partials = pl.pallas_call(
        kernel,
        out_shape=jax.ShapeDtypeStruct((ni, nj, 8, 128), jnp.float32),
        grid_spec=pltpu.PrefetchScalarGridSpec(
            num_scalar_prefetch=0,
            grid=(ni, nj),
            in_specs=[
                pl.BlockSpec(memory_space=pltpu.SMEM),           # min(P) scalar
                pl.BlockSpec((tm, 1), lambda i, j: (i, 0)),      # 0.25*||x||^2 + 1 (rows)
                pl.BlockSpec((1, tn), lambda i, j: (0, j)),      # 0.25*||x||^2 (cols)
                pl.BlockSpec((tm, D), lambda i, j: (i, 0)),      # logits row tile
                pl.BlockSpec((tn, D), lambda i, j: (j, 0)),      # logits column tile
                pl.BlockSpec((tm, tn), lambda i, j: (i, j)),     # P tile
            ],
            out_specs=pl.BlockSpec((1, 1, 8, 128), lambda i, j: (i, j, 0, 0)),
        ),
        compiler_params=pltpu.CompilerParams(**compiler_kwargs),
    )(minp, row_q, col_q, logits, logits, P)

    return -jnp.sum(partials)


def _largevis_loss_ref(logits, P, *, pos_times=20.0, neg_times=1.0, gamma=7.0):
    """Pure-JAX reference mirroring the PyTorch forward exactly."""
    minp = jnp.min(P)
    pos_P = P > minp
    sum_X = jnp.sum(logits ** 2, axis=1)
    D2 = ((-2.0 * (logits @ logits.T) + sum_X).T + sum_X)
    p_d2 = 1.0 / (1.0 + 0.25 * D2)
    p_pos = jnp.clip(p_d2, 1e-12, 1.0 - 1e-12)
    p_neg = jnp.clip(p_d2, 1e-12, 0.99)
    pos_term = jnp.log(p_pos) * pos_times
    neg_term = jnp.log(1.0 - p_neg) * neg_times
    loss = jnp.sum(jnp.where(~pos_P, gamma * neg_term, 0.0))
    loss += jnp.sum(jnp.where(pos_P, pos_term, 0.0))
    return -loss


if __name__ == "__main__":
    key = jax.random.PRNGKey(0)
    k_logits, k_p, k_mask = jax.random.split(key, 3)

    N, D = 256, 32
    logits = jax.random.normal(k_logits, (N, D), dtype=jnp.float32)

    # Sparse-ish similarity matrix: many entries at the minimum (0.0) so both
    # the positive and negative branches are exercised.
    p_vals = jax.random.uniform(k_p, (N, N), dtype=jnp.float32)
    keep = jax.random.uniform(k_mask, (N, N)) > 0.7
    P = jnp.where(keep, p_vals, 0.0)

    out = largevis_loss(logits, P)
    out = jax.block_until_ready(out)

    ref = _largevis_loss_ref(logits, P)
    assert jnp.allclose(out, ref, rtol=2e-3, atol=1e-2), (out, ref)

    print("KERNEL_OK")
</pallas_src>

<mosaic_0001>
module attributes {stable_mosaic.version = 11 : i64} {
  func.func @_largevis_kernel(%arg0: i32, %arg1: i32, %arg2: memref<1xf32, #tpu.memory_space<smem>>, %arg3: memref<128x1xf32, #tpu.memory_space<vmem>>, %arg4: memref<1x256xf32, #tpu.memory_space<vmem>>, %arg5: memref<128x32xf32, #tpu.memory_space<vmem>>, %arg6: memref<256x32xf32, #tpu.memory_space<vmem>>, %arg7: memref<128x256xf32, #tpu.memory_space<vmem>>, %arg8: memref<1x1x8x128xf32, #tpu.memory_space<vmem>>) attributes {dimension_semantics = [#tpu.dimension_semantics<parallel>, #tpu.dimension_semantics<parallel>], iteration_bounds = array<i64: 2, 1>, scalar_prefetch = 0 : i64, scratch_operands = 0 : i64, tpu.core_type = #tpu.core_type<tc>, window_params = [{transform_indices = @transform_0, window_bounds = array<i64: 1>}, {transform_indices = @transform_1, window_bounds = array<i64: 128, 1>}, {transform_indices = @transform_2, window_bounds = array<i64: 1, 256>}, {transform_indices = @transform_3, window_bounds = array<i64: 128, 32>}, {transform_indices = @transform_4, window_bounds = array<i64: 256, 32>}, {transform_indices = @transform_5, window_bounds = array<i64: 128, 256>}, {transform_indices = @transform_6, window_bounds = array<i64: 1, 1, 8, 128>}]} {
    %c0 = arith.constant 0 : index
    %c0_0 = arith.constant 0 : index
    %0 = vector.load %arg5[%c0, %c0_0] : memref<128x32xf32, #tpu.memory_space<vmem>>, vector<128x32xf32>
    %cst = arith.constant -5.000000e-01 : f32
    %1 = vector.broadcast %cst : f32 to vector<128x32xf32>
    %2 = arith.mulf %0, %1 : vector<128x32xf32>
    %c0_1 = arith.constant 0 : index
    %c0_2 = arith.constant 0 : index
    %3 = vector.load %arg6[%c0_1, %c0_2] : memref<256x32xf32, #tpu.memory_space<vmem>>, vector<256x32xf32>
    %4 = tpu.transpose %3, [1, 0] : vector<256x32xf32> -> vector<32x256xf32>
    %cst_3 = arith.constant dense<0.000000e+00> : vector<128x256xf32>
    %5 = tpu.matmul %2, %4, %cst_3 {dimension_numbers = #tpu.dot_dimension_numbers<[1], [0], [0], [1], [0, 0, 1, 1], [], []>} : vector<128x32xf32>, vector<32x256xf32>, vector<128x256xf32> -> vector<128x256xf32>
    %c0_4 = arith.constant 0 : index
    %c0_5 = arith.constant 0 : index
    %6 = vector.load %arg3[%c0_4, %c0_5] : memref<128x1xf32, #tpu.memory_space<vmem>>, vector<128x1xf32>
    %7 = vector.broadcast %6 : vector<128x1xf32> to vector<128x256xf32>
    %8 = arith.addf %5, %7 : vector<128x256xf32>
    %c0_6 = arith.constant 0 : index
    %c0_7 = arith.constant 0 : index
    %9 = vector.load %arg4[%c0_6, %c0_7] : memref<1x256xf32, #tpu.memory_space<vmem>>, vector<1x256xf32>
    %10 = vector.broadcast %9 : vector<1x256xf32> to vector<128x256xf32>
    %11 = arith.addf %8, %10 : vector<128x256xf32>
    %12 = tpu.reciprocal %11 {approx = true} : vector<128x256xf32> -> vector<128x256xf32>
    %c0_8 = arith.constant 0 : index
    %13 = memref.load %arg2[%c0_8] : memref<1xf32, #tpu.memory_space<smem>>
    %c0_9 = arith.constant 0 : index
    %c0_10 = arith.constant 0 : index
    %14 = vector.load %arg7[%c0_9, %c0_10] : memref<128x256xf32, #tpu.memory_space<vmem>>, vector<128x256xf32>
    %15 = vector.broadcast %13 : f32 to vector<128x256xf32>
    %16 = arith.cmpf ogt, %14, %15 : vector<128x256xf32>
    %cst_11 = arith.constant 9.99999996E-13 : f32
    %17 = vector.broadcast %cst_11 : f32 to vector<128x256xf32>
    %18 = arith.maximumf %12, %17 : vector<128x256xf32>
    %cst_12 = arith.constant 1.000000e+00 : f32
    %19 = vector.broadcast %cst_12 : f32 to vector<128x256xf32>
    %20 = arith.minimumf %18, %19 : vector<128x256xf32>
    %cst_13 = arith.constant 1.000000e+00 : f32
    %21 = vector.broadcast %cst_13 : f32 to vector<128x256xf32>
    %22 = arith.subf %21, %18 : vector<128x256xf32>
    %cst_14 = arith.constant 0.00999999977 : f32
    %23 = vector.broadcast %cst_14 : f32 to vector<128x256xf32>
    %24 = arith.maximumf %22, %23 : vector<128x256xf32>
    %25 = arith.select %16, %20, %24 : vector<128x256xi1>, vector<128x256xf32>
    %cst_15 = arith.constant 2.000000e+01 : f32
    %cst_16 = arith.constant 7.000000e+00 : f32
    %26 = vector.broadcast %cst_15 : f32 to vector<128x256xf32>
    %27 = vector.broadcast %cst_16 : f32 to vector<128x256xf32>
    %28 = arith.select %16, %26, %27 : vector<128x256xi1>, vector<128x256xf32>
    %29 = math.log %25 : vector<128x256xf32>
    %30 = arith.mulf %28, %29 : vector<128x256xf32>
    %31 = vector.extract_strided_slice %30 {offsets = [0, 0], sizes = [8, 256], strides = [1, 1]} : vector<128x256xf32> to vector<8x256xf32>
    %32 = vector.extract_strided_slice %30 {offsets = [8, 0], sizes = [8, 256], strides = [1, 1]} : vector<128x256xf32> to vector<8x256xf32>
    %33 = arith.addf %31, %32 : vector<8x256xf32>
    %34 = vector.extract_strided_slice %30 {offsets = [16, 0], sizes = [8, 256], strides = [1, 1]} : vector<128x256xf32> to vector<8x256xf32>
    %35 = arith.addf %33, %34 : vector<8x256xf32>
    %36 = vector.extract_strided_slice %30 {offsets = [24, 0], sizes = [8, 256], strides = [1, 1]} : vector<128x256xf32> to vector<8x256xf32>
    %37 = arith.addf %35, %36 : vector<8x256xf32>
    %38 = vector.extract_strided_slice %30 {offsets = [32, 0], sizes = [8, 256], strides = [1, 1]} : vector<128x256xf32> to vector<8x256xf32>
    %39 = arith.addf %37, %38 : vector<8x256xf32>
    %40 = vector.extract_strided_slice %30 {offsets = [40, 0], sizes = [8, 256], strides = [1, 1]} : vector<128x256xf32> to vector<8x256xf32>
    %41 = arith.addf %39, %40 : vector<8x256xf32>
    %42 = vector.extract_strided_slice %30 {offsets = [48, 0], sizes = [8, 256], strides = [1, 1]} : vector<128x256xf32> to vector<8x256xf32>
    %43 = arith.addf %41, %42 : vector<8x256xf32>
    %44 = vector.extract_strided_slice %30 {offsets = [56, 0], sizes = [8, 256], strides = [1, 1]} : vector<128x256xf32> to vector<8x256xf32>
    %45 = arith.addf %43, %44 : vector<8x256xf32>
    %46 = vector.extract_strided_slice %30 {offsets = [64, 0], sizes = [8, 256], strides = [1, 1]} : vector<128x256xf32> to vector<8x256xf32>
    %47 = arith.addf %45, %46 : vector<8x256xf32>
    %48 = vector.extract_strided_slice %30 {offsets = [72, 0], sizes = [8, 256], strides = [1, 1]} : vector<128x256xf32> to vector<8x256xf32>
    %49 = arith.addf %47, %48 : vector<8x256xf32>
    %50 = vector.extract_strided_slice %30 {offsets = [80, 0], sizes = [8, 256], strides = [1, 1]} : vector<128x256xf32> to vector<8x256xf32>
    %51 = arith.addf %49, %50 : vector<8x256xf32>
    %52 = vector.extract_strided_slice %30 {offsets = [88, 0], sizes = [8, 256], strides = [1, 1]} : vector<128x256xf32> to vector<8x256xf32>
    %53 = arith.addf %51, %52 : vector<8x256xf32>
    %54 = vector.extract_strided_slice %30 {offsets = [96, 0], sizes = [8, 256], strides = [1, 1]} : vector<128x256xf32> to vector<8x256xf32>
    %55 = arith.addf %53, %54 : vector<8x256xf32>
    %56 = vector.extract_strided_slice %30 {offsets = [104, 0], sizes = [8, 256], strides = [1, 1]} : vector<128x256xf32> to vector<8x256xf32>
    %57 = arith.addf %55, %56 : vector<8x256xf32>
    %58 = vector.extract_strided_slice %30 {offsets = [112, 0], sizes = [8, 256], strides = [1, 1]} : vector<128x256xf32> to vector<8x256xf32>
    %59 = arith.addf %57, %58 : vector<8x256xf32>
    %60 = vector.extract_strided_slice %30 {offsets = [120, 0], sizes = [8, 256], strides = [1, 1]} : vector<128x256xf32> to vector<8x256xf32>
    %61 = arith.addf %59, %60 : vector<8x256xf32>
    %62 = vector.extract_strided_slice %61 {offsets = [0, 0], sizes = [8, 128], strides = [1, 1]} : vector<8x256xf32> to vector<8x128xf32>
    %63 = vector.extract_strided_slice %61 {offsets = [0, 128], sizes = [8, 128], strides = [1, 1]} : vector<8x256xf32> to vector<8x128xf32>
    %64 = arith.addf %62, %63 : vector<8x128xf32>
    %65 = vector.shape_cast %64 : vector<8x128xf32> to vector<1x1x8x128xf32>
    %c0_17 = arith.constant 0 : index
    %c0_18 = arith.constant 0 : index
    %c0_19 = arith.constant 0 : index
    %c0_20 = arith.constant 0 : index
    %66 = vector.load %arg8[%c0_17, %c0_18, %c0_19, %c0_20] : memref<1x1x8x128xf32, #tpu.memory_space<vmem>>, vector<1x1x8x128xf32>
    tpu.vector_store %arg8[%c0_17, %c0_18, %c0_19, %c0_20], %65 {strides = array<i32>} : memref<1x1x8x128xf32, #tpu.memory_space<vmem>>, vector<1x1x8x128xf32>,
    return
  }
  func.func @transform_0(%arg0: i32, %arg1: i32) -> i32 {
    %c0_i32 = arith.constant 0 : i32
    %c0_i32_0 = arith.constant 0 : i32
    return %c0_i32 : i32
  }
  func.func @transform_1(%arg0: i32, %arg1: i32) -> (i32, i32) {
    %c0_i32 = arith.constant 0 : i32
    %c0_i32_0 = arith.constant 0 : i32
    return %arg0, %c0_i32 : i32, i32
  }
  func.func @transform_2(%arg0: i32, %arg1: i32) -> (i32, i32) {
    %c0_i32 = arith.constant 0 : i32
    %c0_i32_0 = arith.constant 0 : i32
    return %c0_i32, %arg1 : i32, i32
  }
  func.func @transform_3(%arg0: i32, %arg1: i32) -> (i32, i32) {
    %c0_i32 = arith.constant 0 : i32
    %c0_i32_0 = arith.constant 0 : i32
    return %arg0, %c0_i32 : i32, i32
  }
  func.func @transform_4(%arg0: i32, %arg1: i32) -> (i32, i32) {
    %c0_i32 = arith.constant 0 : i32
    %c0_i32_0 = arith.constant 0 : i32
    return %arg1, %c0_i32 : i32, i32
  }
  func.func @transform_5(%arg0: i32, %arg1: i32) -> (i32, i32) {
    %c0_i32 = arith.constant 0 : i32
    return %arg0, %arg1 : i32, i32
  }
  func.func @transform_6(%arg0: i32, %arg1: i32) -> (i32, i32, i32, i32) {
    %c0_i32 = arith.constant 0 : i32
    %c0_i32_0 = arith.constant 0 : i32
    %c0_i32_1 = arith.constant 0 : i32
    return %arg0, %arg1, %c0_i32, %c0_i32_0 : i32, i32, i32, i32
  }
}

</mosaic_0001>

<bundles_post_ra>
// kernel: tpu_custom_call.1
= control target key start
LH: loop header
LB: loop body
LE: loop exit
PB: predicated region body
PF: predicated region fallthrough
CT: control target
= control target key end

     0   :  { %s2929_s0 = inlined_call_operand.<no memory space> [shape: f32[1], index: 0, kind: input, shape index: {}]   ;;  %s2930_s1 = inlined_call_operand.vmem [shape: f32[256,1], index: 1, kind: input, shape index: {}]   ;;  %s2931_s2 = inlined_call_operand.vmem [shape: f32[1,256], index: 2, kind: input, shape index: {}]   ;;  %s2932_s3 = inlined_call_operand.vmem [shape: f32[256,32], index: 3, kind: input, shape index: {}]   ;;  %s2933_s4 = inlined_call_operand.vmem [shape: f32[256,32], index: 4, kind: input, shape index: {}]   ;;  %s2934_s5 = inlined_call_operand.vmem [shape: f32[256,256], index: 5, kind: input, shape index: {}]   ;;  %s2935_s6 = inlined_call_operand.hbm [shape: f32[2,1,8,128], index: 6, kind: output, shape index: {}]  }
   0x1   :  { %11 = sst [smem:[#allocation2]] %s2929_s0 }
   0x2   :  { %12 = vsyncpa [#allocation4], 0 }
   0x3   :  { %14 = vsyncpa [#allocation4 + $0x1], 0  ;;  %s1943_s23 = smov 0   ;;  %s1945_s24 = smov 0  }
   0x4   :  { %s1947_s25 = smov 0   ;;  %s1949_s26 = smov 0  }
   0x5   :  { %s1951_s27 = smov 0   ;;  %s1953_s28 = smov 0  }
   0x6 LB: > { %s1439_s0 = sadd.s32 4294967295, %s1900_s28   ;;  %s1440_s29 = sadd.s32 4294967294, %s1900_s28   ;;  %s1900_s28 = sphi %s1953_s28, %s20_s28   ;;  %s1896_s27 = sphi %s1951_s27, %s3029_s27   ;;  %s1892_s26 = sphi %s1949_s26, %s3028_s26   ;;  %s1888_s25 = sphi %s1947_s25, %s3027_s25   ;;  %s1884_s24 = sphi %s1945_s24, %s3026_s24   ;;  %s1880_s23 = sphi %s1943_s23, %s3025_s23  }
   0x7   : > { %s32_s30 = sadd.s32 1, %s1896_s27  ;;  %s194_s7 = sadd.s32 1, %s1888_s25 }
   0x8   : > { %p34_p0 = scmp.ge.s32.totalorder %s32_s30, 2  ;;  %p204_p1 = scmp.ne.s32.totalorder %s1888_s25, %s1884_s24 }
   0x9   : > { %p205_p2 = scmp.eq.s32.totalorder %s1439_s0, 1  ;;  %p210_p3 = scmp.ne.s32.totalorder %s1884_s24, %s1880_s23 }
   0xa   : > { %s3031_s30 = smov (%p34_p0, %s32_s30), 0  ;;  %p211_p5 = scmp.eq.s32.totalorder %s1440_s29, 1 }
   0xb   : > { %p1983_p4 = por %p205_p2, %p204_p1  ;;  %s189_s9 = ssub.s32 %s1896_s27, %s3031_s30 }
   0xc   : > { %p1445_p6 = scmp.ge.s32.totalorder %s1900_s28, 1  ;;  %p192_p7 = scmp.eq.s32.totalorder %s189_s9, 0 }
   0xd   : > { %p1990_p8 = por %p211_p5, %p210_p3  ;;  %p282_p9 = scmp.lt.s32.totalorder %s1900_s28, 3 }
   0xe   : > { %s1996_s11 = scalar_select %p192_p7, %s1888_s25, %s194_s7  }
   0xf   : > { %p283_p10 = pnand %p1445_p6, %p282_p9 }
  0x11   : > { %286 = sbr.rel (%p283_p10) target bundleno = 448 (0x1c0), region = 44 }
  0x18   : > { %v419_v0 = vld [vmem:[%s2933_s4 + $0x80] sm:$0xff]  ;;  %v420_v1 = vld [vmem:[%s2933_s4 + $0x88] sm:$0xff]  ;;  %vm531_vm0 = vcmask 261120   ;;  %s1447_s18 = sshll.u32 %s1892_s26, 4  ;;  %v421_v6 = vld [vmem:[%s2933_s4 + $0x90] sm:$0xff]  ;;  %v1902_v7 = vmov 0  }
  0x19   : > { %v403_v2 = vld [vmem:[%s2933_s4] sm:$0xff]  ;;  %v1571_v3 = vpack.c.bf16 %v420_v1, %v419_v0  ;;  %vm2010_vm1 = vmpackc.low %vm531_vm0, %vm531_vm0  ;;  %v404_v5 = vld [vmem:[%s2933_s4 + $0x8] sm:$0xff]  ;;  %p337_p11 = scmp.lt.s32.totalorder %s1447_s18, 31  ;;  %1692 = vset.pattern.permute.xlu0 %v1902_v7  ;;  %1693 = vset.pattern.permute.xlu1 %v1902_v7  ;;  %s1503_s9 = sshll.u32 %s1892_s26, 7 }
  0x1a   : > { %v1574_v8 = vpack.c.bf16 %v404_v5, %v403_v2  ;;  %v422_v9 = vld [vmem:[%s2933_s4 + $0x98] sm:$0xff]  ;;  %v405_v11 = vld [vmem:[%s2933_s4 + $0x10] sm:$0xff]  ;;  %v423_v13 = vld [vmem:[%s2933_s4 + $0xa0] sm:$0xff]  ;;  %s2882_s19 = scalar_lea.hbm %s2935_s6, %s1503_s9  ;;  %s1904_s26 = smov [#allocation3]  }
  0x1b   : > { %1573 = vmatprep.subr.msk.bf16.mxu0 %vm2010_vm1, %v1571_v3  ;;  %1619 = vmatprep.subr.msk.bf16.mxu1 %vm2010_vm1, %v1571_v3  ;;  %v1577_v10 = vpack.c.bf16 %v422_v9, %v421_v6  ;;  %s3033_s18 = smov (!%p337_p11, %s1447_s18), 31  ;;  %v406_v12 = vld [vmem:[%s2933_s4 + $0x18] sm:$0xff]  ;;  %v424_v14 = vld [vmem:[%s2933_s4 + $0xa8] sm:$0xff]  ;;  %v407_v21 = vld [vmem:[%s2933_s4 + $0x20] sm:$0xff] }
  0x1c   : > { %1576 = vmatpush3.bf16.xpose.msk.msra.mxu0 %vm2010_vm1, %v1574_v8  ;;  %1627 = vmatpush3.bf16.xpose.msk.msra.mxu1 %vm2010_vm1, %v1574_v8  ;;  %s1448_s14 = sshll.u32 %s3033_s18, 3  ;;  %v1580_v15 = vpack.c.bf16 %v406_v12, %v405_v11  ;;  %v1583_v16 = vpack.c.bf16 %v424_v14, %v423_v13  ;;  %v408_v22 = vld [vmem:[%s2933_s4 + $0x28] sm:$0xff]  ;;  %v425_v23 = vld [vmem:[%s2933_s4 + $0xb0] sm:$0xff]  ;;  %v426_v24 = vld [vmem:[%s2933_s4 + $0xb8] sm:$0xff]  ;;  %s1506_s20 = sshll.u32 %s3033_s18, 4 }
  0x1d   : > { %1579 = vmatprep.subr.msk.bf16.mxu0 %vm2010_vm1, %v1577_v10  ;;  %1620 = vmatprep.subr.msk.bf16.mxu1 %vm2010_vm1, %v1577_v10  ;;  %s2053_s22 = scalar_lea.vmem %s2932_s3, %s1448_s14  ;;  %s2078_s15 = scalar_lea.vmem %s2930_s1, %s1448_s14  ;;  %v1586_v25 = vpack.c.bf16 %v408_v22, %v407_v21  ;;  %v1589_v28 = vpack.c.bf16 %v426_v24, %v425_v23  ;;  %v409_v31 = vld [vmem:[%s2933_s4 + $0x30] sm:$0xff]  ;;  %v410_v32 = vld [vmem:[%s2933_s4 + $0x38] sm:$0xff]  ;;  %v427_v33 = vld [vmem:[%s2933_s4 + $0xc0] sm:$0xff] }
  0x1e   : > { %v371_v17 = vld [vmem:[%s2053_s22] sm:$0xff]  ;;  %v437_v27 = vld [vmem:[%s2078_s15 + $0x10] sm:$0xff]  ;;  %v436_v29 = vld [vmem:[%s2078_s15 + $0x8] sm:$0xff]  ;;  %v1592_v37 = vpack.c.bf16 %v410_v32, %v409_v31  ;;  %s2262_s0 = scalar_lea.vmem %s2934_s5, %s1506_s20  ;;  %s1826_s14 = sshll.u32 %s1904_s26, 4  ;;  %s1827_s14 = int_to_ptr.vmem [resolvable:$false] %s1826_s14 }
  0x1f   : > { %v379_v18 = vld [vmem:[%s2053_s22 + $0x40] sm:$0xff]  ;;  %v2061_v19 = vmul.f32 -0.5, %v371_v17  ;;  %463 = vperm.xlu1 %1693, %v437_v27   ;;  %v438_v30 = vld [vmem:[%s2078_s15 + $0x18] sm:$0xff]  ;;  %v428_v34 = vld [vmem:[%s2933_s4 + $0xc8] sm:$0xff]  ;;  %s1828_s21 = scalar_lea.vmem %s1827_s14, 256 }
  0x20   : > { %v2063_v20 = vmul.f32 -0.5, %v379_v18  ;;  %v435_v26 = vld [vmem:[%s2078_s15] sm:$0xff]  ;;  %v440_v36 = vld [vmem:[%s2078_s15 + $0x28] sm:$0xff]  ;;  %v1595_v38 = vpack.c.bf16 %v428_v34, %v427_v33  ;;  %v441_v39 = vld [vmem:[%s2078_s15 + $0x30] sm:$0xff] }
  0x21   : > { %1539 = vmatprep.mubr.msk.f32.mxu0 %vm531_vm0, %v2061_v19  ;;  %453 = vperm.xlu0 %1692, %v435_v26   ;;  %v439_v35 = vld [vmem:[%s2078_s15 + $0x20] sm:$0xff]  ;;  %v442_v40 = vld [vmem:[%s2078_s15 + $0x38] sm:$0xff]  ;;  %v412_v42 = vld [vmem:[%s2933_s4 + $0x48] sm:$0xff] }
  0x22   : > { %1555 = vmatprep.mubr.msk.f32.mxu1 %vm531_vm0, %v2063_v20  ;;  %v411_v41 = vld [vmem:[%s2933_s4 + $0x40] sm:$0xff]  ;;  %v429_v43 = vld [vmem:[%s2933_s4 + $0xd0] sm:$0xff]  ;;  %v430_v44 = vld [vmem:[%s2933_s4 + $0xd8] sm:$0xff] }
  0x23   : > { %468 = vperm.xlu1 %1693, %v438_v30   ;;  %v443_v45 = vld [vmem:[%s2078_s15 + $0x40] sm:$0xff]  ;;  %v444_v46 = vld [vmem:[%s2078_s15 + $0x48] sm:$0xff]  ;;  %v1598_v47 = vpack.c.bf16 %v412_v42, %v411_v41  ;;  %v1601_v48 = vpack.c.bf16 %v430_v44, %v429_v43  ;;  %v445_v49 = vld [vmem:[%s2078_s15 + $0x50] sm:$0xff] }
  0x24   : > { %1582 = vmatpush3.bf16.xpose.msk.msra.mxu0 %vm2010_vm1, %v1580_v15  ;;  %1628 = vmatpush3.bf16.xpose.msk.msra.mxu1 %vm2010_vm1, %v1580_v15  ;;  %v446_v50 = vld [vmem:[%s2078_s15 + $0x58] sm:$0xff]  ;;  %v413_v51 = vld [vmem:[%s2933_s4 + $0x50] sm:$0xff]  ;;  %v431_v53 = vld [vmem:[%s2933_s4 + $0xe0] sm:$0xff] }
  0x25   : > { %1585 = vmatprep.subr.msk.bf16.mxu0 %vm2010_vm1, %v1583_v16  ;;  %1621 = vmatprep.subr.msk.bf16.mxu1 %vm2010_vm1, %v1583_v16  ;;  %v414_v52 = vld [vmem:[%s2933_s4 + $0x58] sm:$0xff]  ;;  %v432_v54 = vld [vmem:[%s2933_s4 + $0xe8] sm:$0xff]  ;;  %v447_v55 = vld [vmem:[%s2078_s15 + $0x60] sm:$0xff] }
  0x26   : > { %458 = vperm.xlu0 %1692, %v436_v29   ;;  %v448_v56 = vld [vmem:[%s2078_s15 + $0x68] sm:$0xff]  ;;  %v1604_v57 = vpack.c.bf16 %v414_v52, %v413_v51  ;;  %v1607_v58 = vpack.c.bf16 %v432_v54, %v431_v53  ;;  %v449_v59 = vld [vmem:[%s2078_s15 + $0x70] sm:$0xff]  ;;  %v450_v60 = vld [vmem:[%s2078_s15 + $0x78] sm:$0xff]  ;;  %s333_s15 = sand.u32 1, %s1884_s24  }
  0x27   : > { %478 = vperm.xlu1 %1693, %v440_v36   ;;  %v415_v61 = vld [vmem:[%s2933_s4 + $0x60] sm:$0xff]  ;;  %v416_v62 = vld [vmem:[%s2933_s4 + $0x68] sm:$0xff]  ;;  %v433_v63 = vld [vmem:[%s2933_s4 + $0xf0] sm:$0xff]  ;;  %s1446_s7 = sshll.u32 %s333_s15, 3 }
  0x28   : > { %v434_v0 = vld [vmem:[%s2933_s4 + $0xf8] sm:$0xff]  ;;  %v1610_v1 = vpack.c.bf16 %v416_v62, %v415_v61  ;;  %v417_v3 = vld [vmem:[%s2933_s4 + $0x70] sm:$0xff]  ;;  %v372_v7 = vld [vmem:[%s2053_s22 + $0x8] sm:$0xff]  ;;  %s335_s12 = scalar_lea.vmem [#allocation3], %s1446_s7 }
  0x29   : > { %v1613_v2 = vpack.c.bf16 %v434_v0, %v433_v63  ;;  %v418_v5 = vld [vmem:[%s2933_s4 + $0x78] sm:$0xff]  ;;  %v380_v8 = vld [vmem:[%s2053_s22 + $0x48] sm:$0xff]  ;;  %v388_v9 = vmul.f32 -0.5, %v372_v7  ;;  %v373_v11 = vld [vmem:[%s2053_s22 + $0x10] sm:$0xff]  ;;  %s1314_s13 = sshll.u32 %s335_s12, 4  ;;  %s2884_s13 = int_to_ptr.vmem [resolvable:$true] %s1314_s13 }
  0x2a   : > { %473 = vperm.xlu0 %1692, %v439_v35   ;;  %v1616_v6 = vpack.c.bf16 %v418_v5, %v417_v3  ;;  %v396_v10 = vmul.f32 -0.5, %v380_v8  ;;  %v381_v12 = vld [vmem:[%s2053_s22 + $0x50] sm:$0xff]  ;;  %v389_v4 = vmul.f32 -0.5, %v373_v11  ;;  %v374_v14 = vld [vmem:[%s2053_s22 + $0x18] sm:$0xff]  ;;  %v375_v18 = vld [vmem:[%s2053_s22 + $0x20] sm:$0xff]  ;;  %s1822_s20 = scalar_lea.vmem %s2884_s13, 128  ;;  %p1829_p1 = scmp.lt.s32.totalorder %s2884_s13, %s1827_s14 }
  0x2b   : > { %488 = vperm.xlu1 %1693, %v442_v40   ;;  %v397_v13 = vmul.f32 -0.5, %v381_v12  ;;  %v382_v15 = vld [vmem:[%s2053_s22 + $0x58] sm:$0xff]  ;;  %v390_v16 = vmul.f32 -0.5, %v374_v14  ;;  %v376_v22 = vld [vmem:[%s2053_s22 + $0x28] sm:$0xff]  ;;  %v377_v26 = vld [vmem:[%s2053_s22 + $0x30] sm:$0xff]  ;;  %p1823_p12 = scmp.ne.s32.totalorder %s2884_s13, %s1822_s20  ;;  %p1830_p2 = scmp.lt.s32.totalorder %s1828_s21, %s1822_s20 }
  0x2c   : > { %1588 = vmatpush3.bf16.xpose.msk.msra.mxu0 %vm2010_vm1, %v1586_v25  ;;  %1629 = vmatpush3.bf16.xpose.msk.msra.mxu1 %vm2010_vm1, %v1586_v25  ;;  %v398_v17 = vmul.f32 -0.5, %v382_v15  ;;  %v384_v23 = vld [vmem:[%s2053_s22 + $0x68] sm:$0xff]  ;;  %v392_v24 = vmul.f32 -0.5, %v376_v22  ;;  %v385_v27 = vld [vmem:[%s2053_s22 + $0x70] sm:$0xff]  ;;  %v378_v30 = vld [vmem:[%s2053_s22 + $0x38] sm:$0xff] }
  0x2d   : > { %1591 = vmatprep.subr.msk.bf16.mxu0 %vm2010_vm1, %v1589_v28  ;;  %1622 = vmatprep.subr.msk.bf16.mxu1 %vm2010_vm1, %v1589_v28  ;;  %v400_v25 = vmul.f32 -0.5, %v384_v23  ;;  %v393_v28 = vmul.f32 -0.5, %v377_v26  ;;  %v401_v29 = vmul.f32 -0.5, %v385_v27  ;;  %v386_v31 = vld [vmem:[%s2053_s22 + $0x78] sm:$0xff]  ;;  %v394_v32 = vmul.f32 -0.5, %v378_v30  ;;  %v2270_v44 = vld [vmem:[%s2262_s0] sm:$0xff]  ;;  %p1824_p13 = pnand %p1823_p12, %p1983_p4  ;;  %p1831_p3 = por %p1830_p2, %p1829_p1 }
  0x2e   : > { %483 = vperm.xlu0 %1692, %v441_v39   ;;  %v402_v33 = vmul.f32 -0.5, %v386_v31  ;;  %v837_v43 = vld [vmem:[%s2931_s2] sm:$0x3]  ;;  %v2292_v52 = vld [vmem:[%s2262_s0 + $0x88] sm:$0xff]  ;;  %v2324_v61 = vld [vmem:[%s2262_s0 + $0x90] sm:$0xff] }
  0x2f   : > { %498 = vperm.xlu1 %1693, %v444_v46   ;;  %v2275_v46 = vld [vmem:[%s2262_s0 + $0x8] sm:$0xff]  ;;  %v2289_v51 = vld [vmem:[%s2262_s0 + $0x80] sm:$0xff]  ;;  %v2327_v62 = vld [vmem:[%s2262_s0 + $0x98] sm:$0xff]  ;;  %p1825_p0 = pneg %p1824_p13 }
  0x30   : > { %v2295_v53 = vld [vmem:[%s2262_s0 + $0x28] sm:$0xff]  ;;  %v2330_v63 = vld [vmem:[%s2262_s0 + $0x30] sm:$0xff]  ;;  %v2341_v0 = vld [vmem:[%s2262_s0 + $0x38] sm:$0xff] }
  0x31   : > { %v2360_v3 = vld [vmem:[%s2262_s0 + $0xb0] sm:$0xff]  ;;  %v2377_v7 = vld [vmem:[%s2262_s0 + $0xb8] sm:$0xff]  ;;  %v2420_v14 = vld [vmem:[%s2262_s0 + $0x40] sm:$0xff]  ;;  %p1832_p5 = pnand %p1831_p3, %p1825_p0 }
  0x32   : > { %493 = vperm.xlu0 %1692, %v443_v45   ;;  %2963 = vst [vmem:[#allocation8_spill] sm:$0xff] %v2420_v14  ;;  %v2459_v27 = vld [vmem:[%s2262_s0 + $0x48] sm:$0xff] }
  0x33   : > { %508 = vperm.xlu1 %1693, %v446_v50   ;;  %v2286_v50 = vld [vmem:[%s2262_s0 + $0x20] sm:$0xff]  ;;  %2968 = vst [vmem:[#allocation13_spill] sm:$0xff] %v2459_v27 }
  0x34   : > { %1594 = vmatpush3.bf16.xpose.msk.msra.mxu0 %vm2010_vm1, %v1592_v37  ;;  %1630 = vmatpush3.bf16.xpose.msk.msra.mxu1 %vm2010_vm1, %v1592_v37  ;;  %v839_v37 = vlaneseq }
  0x35   : > { %1597 = vmatprep.subr.msk.bf16.mxu0 %vm2010_vm1, %v1595_v38  ;;  %1623 = vmatprep.subr.msk.bf16.mxu1 %vm2010_vm1, %v1595_v38 }
  0x36   : > { %503 = vperm.xlu0 %1692, %v445_v49   ;;  %v840_v39 = vshrl.u32 %v839_v37, 7  ;;  %v2283_v49 = vld [vmem:[%s2262_s0 + $0x18] sm:$0xff] }
  0x37   : > { %518 = vperm.xlu1 %1693, %v448_v56  }
  0x38   : > { %v841_v41 = vsub.s32 0, %v840_v39  ;;  %v845_v42 = vsub.s32 1, %v840_v39 }
  0x3a   : > { %513 = vperm.xlu0 %1692, %v447_v55   ;;  %v2299_v55 = vrot.slane %v837_v43, %v841_v41  ;;  %v2303_v56 = vrot.slane %v837_v43, %v845_v42  ;;  %v2487_v41 = vld [vmem:[%s2262_s0 + $0xd0] sm:$0xff] }
  0x3b   : > { %528 = vperm.xlu1 %1693, %v450_v60   ;;  %2973 = vst [vmem:[#allocation18_spill] sm:$0xff] %v2487_v41 }
  0x3c   : > { %1600 = vmatpush3.bf16.xpose.msk.msra.mxu0 %vm2010_vm1, %v1598_v47  ;;  %1631 = vmatpush3.bf16.xpose.msk.msra.mxu1 %vm2010_vm1, %v1598_v47 }
  0x3d   : > { %1603 = vmatprep.subr.msk.bf16.mxu0 %vm2010_vm1, %v1601_v48  ;;  %1624 = vmatprep.subr.msk.bf16.mxu1 %vm2010_vm1, %v1601_v48  ;;  %v2280_v48 = vld [vmem:[%s2262_s0 + $0x10] sm:$0xff] }
  0x3e   : > { %523 = vperm.xlu0 %1692, %v449_v59   ;;  %v2941_v59 = vmov 7.0  }
  0x44   : > { %1606 = vmatpush3.bf16.xpose.msk.msra.mxu0 %vm2010_vm1, %v1604_v57  ;;  %1632 = vmatpush3.bf16.xpose.msk.msra.mxu1 %vm2010_vm1, %v1604_v57  ;;  %v2306_v57 = vld [vmem:[%s2262_s0 + $0xa0] sm:$0xff] }
  0x45   : > { %1609 = vmatprep.subr.msk.bf16.mxu0 %vm2010_vm1, %v1607_v58  ;;  %1625 = vmatprep.subr.msk.bf16.mxu1 %vm2010_vm1, %v1607_v58  ;;  %v2309_v58 = vld [vmem:[%s2262_s0 + $0xa8] sm:$0xff] }
  0x4c   : > { %1612 = vmatpush3.bf16.xpose.msk.msra.mxu0 %vm2010_vm1, %v1610_v1  ;;  %1633 = vmatpush3.bf16.xpose.msk.msra.mxu1 %vm2010_vm1, %v1610_v1 }
  0x4d   : > { %1615 = vmatprep.subr.msk.bf16.mxu0 %vm2010_vm1, %v1613_v2  ;;  %1626 = vmatprep.subr.msk.bf16.mxu1 %vm2010_vm1, %v1613_v2 }
  0x54   : > { %1618 = vmatpush3.bf16.xpose.msk.msra.mxu0 %vm2010_vm1, %v1616_v6  ;;  %1634 = vmatpush3.bf16.xpose.msk.msra.mxu1 %vm2010_vm1, %v1616_v6 }
  0x5b   : > { %1540 = vmatmul.mubr.msk.f32.vlgmr.msra.gmra.mrb[0].mxu0 %vm531_vm0, %v2061_v19  ;;  %1556 = vmatmul.mubr.msk.f32.vlgmr.msra.gmra.mrb[0].mxu1 %vm531_vm0, %v2063_v20  ;;  %v383_v19 = vld [vmem:[%s2053_s22 + $0x60] sm:$0xff]  ;;  %v391_v20 = vmul.f32 -0.5, %v375_v18  ;;  %s913_s22 = sld [smem:[#allocation2]] }
  0x5c   : > { %1541 = vmatprep.mubr.msk.f32.mxu0 %vm531_vm0, %v388_v9  ;;  %1557 = vmatprep.mubr.msk.f32.mxu1 %vm531_vm0, %v396_v10  ;;  %v399_v21 = vmul.f32 -0.5, %v383_v19 }
  0x5f   : > { %1542 = vmatmul.mubr.msk.f32.gmra.mrb[2].mxu0 %vm531_vm0, %v388_v9  ;;  %1558 = vmatmul.mubr.msk.f32.gmra.mrb[2].mxu1 %vm531_vm0, %v396_v10 }
  0x60   : > { %1543 = vmatprep.mubr.msk.f32.mxu0 %vm531_vm0, %v389_v4  ;;  %1559 = vmatprep.mubr.msk.f32.mxu1 %vm531_vm0, %v397_v13 }
  0x61   : > { %v2272_v45 = vstv %s913_s22  ;;  %s1300_s22 = scalar_lea.sflag [#allocation4], %s333_s15 }
  0x62   : > { %vm947_vm2 = vcmp.gt.f32.partialorder %v2270_v44, %v2272_v45  ;;  %vm948_vm3 = vcmp.gt.f32.partialorder %v2275_v46, %v2272_v45  ;;  %vm949_vm4 = vcmp.gt.f32.partialorder %v2280_v48, %v2272_v45  ;;  %vm950_vm5 = vcmp.gt.f32.partialorder %v2283_v49, %v2272_v45 }
  0x63   : > { %1544 = vmatmul.mubr.msk.f32.gmra.mrb[4].mxu0 %vm531_vm0, %v389_v4  ;;  %1560 = vmatmul.mubr.msk.f32.gmra.mrb[4].mxu1 %vm531_vm0, %v397_v13  ;;  %v2315_v60 = vsel %vm947_vm2, 20.0, %v2941_v59  ;;  %vm963_vm6 = vcmp.gt.f32.partialorder %v2289_v51, %v2272_v45  ;;  %vm964_vm7 = vcmp.gt.f32.partialorder %v2292_v52, %v2272_v45  ;;  %vm951_vm8 = vcmp.gt.f32.partialorder %v2286_v50, %v2272_v45 }
  0x64   : > { %1545 = vmatprep.mubr.msk.f32.mxu0 %vm531_vm0, %v390_v16  ;;  %1561 = vmatprep.mubr.msk.f32.mxu1 %vm531_vm0, %v398_v17  ;;  %vm952_vm9 = vcmp.gt.f32.partialorder %v2295_v53, %v2272_v45  ;;  %v2347_v1 = vsel %vm948_vm3, 20.0, %v2941_v59  ;;  %v2353_v2 = vsel %vm949_vm4, 20.0, %v2941_v59  ;;  %vm2944_vm10 = vcmp.gt.f32.partialorder %v2306_v57, %v2272_v45 }
  0x65   : > { %vm2943_vm11 = vcmp.gt.f32.partialorder %v2309_v58, %v2272_v45  ;;  %v2368_v6 = vsel %vm950_vm5, 20.0, %v2941_v59  ;;  %vm965_vm12 = vcmp.gt.f32.partialorder %v2324_v61, %v2272_v45  ;;  %vm2946_vm13 = vcmp.gt.f32.partialorder %v2327_v62, %v2272_v45 }
  0x66   : > { %vm2939_vm14 = vcmp.gt.f32.partialorder %v2330_v63, %v2272_v45  ;;  %v2383_v8 = vsel %vm963_vm6, 20.0, %v2941_v59  ;;  %v2389_v9 = vsel %vm964_vm7, 20.0, %v2941_v59  ;;  %v2395_v10 = vsel %vm951_vm8, 20.0, %v2941_v59 }
  0x67   : > { %1546 = vmatmul.mubr.msk.f32.gmra.mrb[6].mxu0 %vm531_vm0, %v390_v16  ;;  %1562 = vmatmul.mubr.msk.f32.gmra.mrb[6].mxu1 %vm531_vm0, %v398_v17  ;;  %vm2936_vm15 = vcmp.gt.f32.partialorder %v2341_v0, %v2272_v45  ;;  %v2403_v12 = vsel %vm965_vm12, 20.0, %v2941_v59  ;;  %v2409_v4 = vsel %vm952_vm9, 20.0, %v2941_v59  ;;  %v2415_v13 = vsel %vm2946_vm13, 20.0, %v2941_v59 }
  0x68   : > { %1547 = vmatprep.mubr.msk.f32.mxu0 %vm531_vm0, %v391_v20  ;;  %1563 = vmatprep.mubr.msk.f32.mxu1 %vm531_vm0, %v399_v21  ;;  %v2426_v17 = vsel %vm2944_vm10, 20.0, %v2941_v59  ;;  %v2432_v18 = vsel %vm2943_vm11, 20.0, %v2941_v59  ;;  %v2438_v19 = vsel %vm2939_vm14, 20.0, %v2941_v59  ;;  %vm2937_vm1 = vcmp.gt.f32.partialorder %v2377_v7, %v2272_v45 }
  0x69   : > { %2964 = vst [vmem:[#allocation9_spill] sm:$0xff] %v2438_v19  ;;  %v2469_v31 = vsel %vm2937_vm1, 20.0, %v2941_v59  ;;  %vm973_vm11 = vcmp.gt.f32.partialorder %v2487_v41, %v2272_v45 }
  0x6a   : > { %2970 = vst [vmem:[#allocation15_spill] sm:$0xff] %v2469_v31 }
  0x6b   : > { %1548 = vmatmul.mubr.msk.f32.gmra.mrb[8].mxu0 %vm531_vm0, %v391_v20  ;;  %1564 = vmatmul.mubr.msk.f32.gmra.mrb[8].mxu1 %vm531_vm0, %v399_v21  ;;  %v2443_v20 = vld [vmem:[%s2262_s0 + $0xc0] sm:$0xff] }
  0x6c   : > { %1549 = vmatprep.mubr.msk.f32.mxu0 %vm531_vm0, %v392_v24  ;;  %1565 = vmatprep.mubr.msk.f32.mxu1 %vm531_vm0, %v400_v25  ;;  %2965 = vst [vmem:[#allocation10_spill] sm:$0xff] %v2443_v20  ;;  %vm971_vm1 = vcmp.gt.f32.partialorder %v2443_v20, %v2272_v45 }
  0x6f   : > { %1550 = vmatmul.mubr.msk.f32.gmra.mrb[10].mxu0 %vm531_vm0, %v392_v24  ;;  %1566 = vmatmul.mubr.msk.f32.gmra.mrb[10].mxu1 %vm531_vm0, %v400_v25  ;;  %v2450_v25 = vsel %vm2936_vm15, 20.0, %v2941_v59  ;;  %vm2940_vm15 = vcmp.gt.f32.partialorder %v2420_v14, %v2272_v45 }
  0x70   : > { %1551 = vmatprep.mubr.msk.f32.mxu0 %vm531_vm0, %v393_v28  ;;  %1567 = vmatprep.mubr.msk.f32.mxu1 %vm531_vm0, %v401_v29  ;;  %2966 = vst [vmem:[#allocation11_spill] sm:$0xff] %v2450_v25 }
  0x73   : > { %1552 = vmatmul.mubr.msk.f32.gmra.mrb[12].mxu0 %vm531_vm0, %v393_v28  ;;  %1568 = vmatmul.mubr.msk.f32.gmra.mrb[12].mxu1 %vm531_vm0, %v401_v29  ;;  %v2462_v28 = vld [vmem:[%s2262_s0 + $0xc8] sm:$0xff] }
  0x74   : > { %1553 = vmatprep.mubr.msk.f32.mxu0 %vm531_vm0, %v394_v32  ;;  %1569 = vmatprep.mubr.msk.f32.mxu1 %vm531_vm0, %v402_v33  ;;  %2969 = vst [vmem:[#allocation14_spill] sm:$0xff] %v2462_v28  ;;  %vm972_vm14 = vcmp.gt.f32.partialorder %v2462_v28, %v2272_v45 }
  0x77   : > { %1554 = vmatmul.mubr.msk.f32.gmra.mrb[14].mxu0 %vm531_vm0, %v394_v32  ;;  %1570 = vmatmul.mubr.msk.f32.gmra.mrb[14].mxu1 %vm531_vm0, %v402_v33  ;;  %vm2938_vm0 = vcmp.gt.f32.partialorder %v2360_v3, %v2272_v45  ;;  %v2474_v32 = vld [vmem:[%s2262_s0 + $0x50] sm:$0xff] }
  0x78   : > { %v2456_v26 = vsel %vm2938_vm0, 20.0, %v2941_v59  ;;  %2971 = vst [vmem:[#allocation16_spill] sm:$0xff] %v2474_v32  ;;  %vm956_vm0 = vcmp.gt.f32.partialorder %v2459_v27, %v2272_v45 }
  0x79   : > { %2967 = vst [vmem:[#allocation12_spill] sm:$0xff] %v2456_v26 }
  0x9e   : > { %v2252_v35 = vpop.permute.xlu1 %463 }
  0xa0   : > { %v2250_v34 = vpop.permute.xlu0 %453 }
  0xa2   : > { %v2257_v38 = vpop.permute.xlu1 %468 }
  0xa5   : > { %v2254_v36 = vpop.permute.xlu0 %458 }
  0xa6   : > { %v2277_v47 = vpop.permute.xlu1 %478 }
  0xa9   : > { %v2264_v40 = vpop.permute.xlu0 %473 }
  0xaa   : > { %v2362_v5 = vpop.permute.xlu1 %488 }
  0xab   : > { %2962 = vst [vmem:[#allocation7_spill] sm:$0xff] %v2362_v5 }
  0xad   : > { %v2297_v54 = vpop.permute.xlu0 %483 }
  0xae   : > { %2961 = vst [vmem:[#allocation6_spill] sm:$0xff] %v2297_v54  ;;  %v499_v37 = vpop.permute.xlu1 %498 }
  0xb1   : > { %v494_v11 = vpop.permute.xlu0 %493 }
 0x12e   : > { %v742_v15 = vpop.f32.mrb[0].mxu0  ;;  %v790_v16 = vpop.f32.mrb[0].mxu1 }
 0x12f   : > { %v743_v21 = vadd.f32 %v742_v15, %v2250_v34  ;;  %v744_v22 = vpop.f32.mrb[1].mxu0  ;;  %v791_v23 = vadd.f32 %v790_v16, %v494_v11  ;;  %v792_v24 = vpop.f32.mrb[1].mxu1  ;;  %v2496_v16 = vld [vmem:[%s2262_s0 + $0x58] sm:$0xff] }
 0x130   : > { %v745_v29 = vadd.f32 %v744_v22, %v2250_v34  ;;  %v793_v30 = vadd.f32 %v792_v24, %v494_v11  ;;  %v2482_v34 = vsel %vm2940_vm15, 20.0, %v2941_v59  ;;  %2974 = vst [vmem:[#allocation19_spill] sm:$0xff] %v2496_v16  ;;  %vm957_vm15 = vcmp.gt.f32.partialorder %v2474_v32, %v2272_v45 }
 0x131   : > { %v849_v33 = vadd.f32 %v2299_v55, %v743_v21  ;;  %v865_v39 = vadd.f32 %v2299_v55, %v791_v23  ;;  %2972 = vst [vmem:[#allocation17_spill] sm:$0xff] %v2482_v34  ;;  %vm958_vm10 = vcmp.gt.f32.partialorder %v2496_v16, %v2272_v45 }
 0x132   : > { %v850_v42 = vadd.f32 %v2303_v56, %v745_v29  ;;  %v748_v43 = vpop.f32.mrb[2].mxu0  ;;  %v866_v11 = vadd.f32 %v2303_v56, %v793_v30  ;;  %v796_v15 = vpop.f32.mrb[2].mxu1  ;;  %v2502_v29 = vld [vmem:[%s2262_s0 + $0x60] sm:$0xff] }
 0x133   : > { %1694 = vrcp.f32 %v849_v33  ;;  %v749_v21 = vadd.f32 %v748_v43, %v2254_v36  ;;  %v750_v22 = vpop.f32.mrb[3].mxu0  ;;  %v797_v23 = vadd.f32 %v796_v15, %v499_v37  ;;  %v798_v24 = vpop.f32.mrb[3].mxu1  ;;  %2975 = vst [vmem:[#allocation20_spill] sm:$0xff] %v2502_v29  ;;  %vm959_vm13 = vcmp.gt.f32.partialorder %v2502_v29, %v2272_v45 }
 0x134   : > { %1696 = vrcp.f32 %v850_v42  ;;  %v751_v30 = vadd.f32 %v750_v22, %v2254_v36  ;;  %v799_v59 = vadd.f32 %v798_v24, %v499_v37  ;;  %v504_v33 = vpop.permute.xlu0 %503 }
 0x135   : > { %v851_v34 = vadd.f32 %v2299_v55, %v749_v21  ;;  %1698 = vrcp.f32 %v865_v39  ;;  %v867_v43 = vadd.f32 %v2299_v55, %v797_v23  ;;  %v2976_v23 = vmov 7.0  }
 0x136   : > { %v852_v15 = vadd.f32 %v2303_v56, %v751_v30  ;;  %1700 = vrcp.f32 %v866_v11  ;;  %v754_v14 = vpop.f32.mrb[4].mxu0  ;;  %v868_v42 = vadd.f32 %v2303_v56, %v799_v59  ;;  %v802_v36 = vpop.f32.mrb[4].mxu1  ;;  %v2520_v24 = vsel %vm971_vm1, 20.0, %v2976_v23 }
 0x137   : > { %1702 = vrcp.f32 %v851_v34  ;;  %v755_v37 = vadd.f32 %v754_v14, %v2252_v35  ;;  %v756_v21 = vpop.f32.mrb[5].mxu0  ;;  %v803_v39 = vadd.f32 %v802_v36, %v504_v33  ;;  %v804_v22 = vpop.f32.mrb[5].mxu1  ;;  %2977 = vst [vmem:[#allocation21_spill] sm:$0xff] %v2520_v24  ;;  %v2527_v34 = vsel %vm956_vm0, 20.0, %v2976_v23 }
 0x138   : > { %1704 = vrcp.f32 %v852_v15  ;;  %v757_v11 = vadd.f32 %v756_v21, %v2252_v35  ;;  %v805_v59 = vadd.f32 %v804_v22, %v504_v33  ;;  %2978 = vst [vmem:[#allocation22_spill] sm:$0xff] %v2527_v34  ;;  %v509_v30 = vpop.permute.xlu1 %508  ;;  %v2535_v15 = vsel %vm972_vm14, 20.0, %v2976_v23 }
 0x139   : > { %v853_v14 = vadd.f32 %v2299_v55, %v755_v37  ;;  %1706 = vrcp.f32 %v867_v43  ;;  %v869_v36 = vadd.f32 %v2299_v55, %v803_v39  ;;  %2979 = vst [vmem:[#allocation23_spill] sm:$0xff] %v2535_v15  ;;  %v2543_v43 = vsel %vm957_vm15, 20.0, %v2976_v23  ;;  %v2559_v15 = vpop.permute.xlu0 %513 }
 0x13a   : > { %v854_v35 = vadd.f32 %v2303_v56, %v757_v11  ;;  %1708 = vrcp.f32 %v868_v42  ;;  %v870_v33 = vadd.f32 %v2303_v56, %v805_v59  ;;  %v760_v21 = vpop.f32.mrb[6].mxu0  ;;  %v808_v22 = vpop.f32.mrb[6].mxu1  ;;  %2980 = vst [vmem:[#allocation24_spill] sm:$0xff] %v2543_v43  ;;  %v2550_v42 = vsel %vm958_vm10, 20.0, %v2976_v23 }
 0x13b   : > { %1710 = vrcp.f32 %v853_v14  ;;  %v761_v37 = vadd.f32 %v760_v21, %v2257_v38  ;;  %v762_v39 = vpop.f32.mrb[7].mxu0  ;;  %v809_v24 = vadd.f32 %v808_v22, %v509_v30  ;;  %v810_v34 = vpop.f32.mrb[7].mxu1  ;;  %2981 = vst [vmem:[#allocation25_spill] sm:$0xff] %v2550_v42  ;;  %v2557_v14 = vsel %vm959_vm13, 20.0, %v2976_v23 }
 0x13c   : > { %1712 = vrcp.f32 %v854_v35  ;;  %v763_v11 = vadd.f32 %v762_v39, %v2257_v38  ;;  %v811_v59 = vadd.f32 %v810_v34, %v509_v30  ;;  %2982 = vst [vmem:[#allocation26_spill] sm:$0xff] %v2557_v14  ;;  %v2567_v38 = vsel %vm973_vm11, 20.0, %v2976_v23 }
 0x13d   : > { %v1695_v21 = vpop.eup %1694  ;;  %1714 = vrcp.f32 %v869_v36  ;;  %v855_v22 = vadd.f32 %v2299_v55, %v761_v37  ;;  %v871_v43 = vadd.f32 %v2299_v55, %v809_v24  ;;  %2983 = vst [vmem:[#allocation27_spill] sm:$0xff] %v2567_v38 }
 0x13e   : > { %v1697_v34 = vpop.eup %1696  ;;  %v979_v30 = vmax.f32 %v1695_v21, 1e-12  ;;  %1716 = vrcp.f32 %v870_v33  ;;  %v856_v35 = vadd.f32 %v2303_v56, %v763_v11  ;;  %v2571_v39 = vadd.f32 %v2303_v56, %v811_v59  ;;  %v766_v14 = vpop.f32.mrb[8].mxu0 }
 0x13f   : > { %v814_v36 = vpop.f32.mrb[8].mxu1  ;;  %v1699_v42 = vpop.eup %1698  ;;  %v980_v37 = vmax.f32 %v1697_v34, 1e-12  ;;  %1718 = vrcp.f32 %v855_v22  ;;  %v2574_v24 = vadd.f32 %v766_v14, %v2264_v40 }
 0x140   : > { %v2577_v29 = vadd.f32 %v814_v36, %v2559_v15  ;;  %v2579_v38 = vpop.f32.mrb[9].mxu0  ;;  %v2581_v21 = vpop.f32.mrb[9].mxu1  ;;  %v1011_v11 = vmin.f32 %v979_v30, 1.0  ;;  %v1043_v23 = vsub.f32 1.0, %v979_v30  ;;  %v995_v59 = vmax.f32 %v1699_v42, 1e-12 }
 0x141   : > { %v1701_v33 = vpop.eup %1700  ;;  %1720 = vrcp.f32 %v856_v35  ;;  %v1012_v41 = vmin.f32 %v980_v37, 1.0  ;;  %v1044_v32 = vsub.f32 1.0, %v980_v37 }
 0x142   : > { %v1703_v16 = vpop.eup %1702  ;;  %v996_v34 = vmax.f32 %v1701_v33, 1e-12  ;;  %1722 = vrcp.f32 %v871_v43  ;;  %v1075_v14 = vmax.f32 %v1043_v23, 0.01  ;;  %v1027_v27 = vmin.f32 %v995_v59, 1.0  ;;  %v2586_v33 = vpop.f32.mrb[10].mxu0 }
 0x143   : > { %v1705_v22 = vpop.eup %1704  ;;  %v981_v28 = vmax.f32 %v1703_v16, 1e-12  ;;  %v1059_v36 = vsub.f32 1.0, %v995_v59  ;;  %v1076_v31 = vmax.f32 %v1044_v32, 0.01  ;;  %v2588_v43 = vpop.f32.mrb[10].mxu1 }
 0x144   : > { %v1707_v20 = vpop.eup %1706  ;;  %v982_v26 = vmax.f32 %v1705_v22, 1e-12  ;;  %v1028_v25 = vmin.f32 %v996_v34, 1.0  ;;  %v1060_v5 = vsub.f32 1.0, %v996_v34  ;;  %v1107_v42 = vsel %vm947_vm2, %v1011_v11, %v1075_v14  ;;  %v2593_v34 = vpop.f32.mrb[11].mxu0 }
 0x145   : > { %v1709_v19 = vpop.eup %1708  ;;  %v1013_v30 = vmin.f32 %v981_v28, 1.0  ;;  %v1045_v35 = vsub.f32 1.0, %v981_v28  ;;  %v1091_v37 = vmax.f32 %v1059_v36, 0.01  ;;  %1724 = vlog2.f32 %v1107_v42  ;;  %v2595_v22 = vpop.f32.mrb[11].mxu1 }
 0x146   : > { %v1711_v16 = vpop.eup %1710  ;;  %v1108_v32 = vsel %vm948_vm3, %v1012_v41, %v1076_v31  ;;  %v1014_v23 = vmin.f32 %v982_v26, 1.0  ;;  %v1046_v59 = vsub.f32 1.0, %v982_v26  ;;  %v1092_v14 = vmax.f32 %v1060_v5, 0.01  ;;  %v2600_v36 = vpop.f32.mrb[12].mxu0 }
 0x147   : > { %v1713_v44 = vpop.eup %1712  ;;  %1726 = vlog2.f32 %v1108_v32  ;;  %v1077_v28 = vmax.f32 %v1045_v35, 0.01  ;;  %v1123_v11 = vsel %vm963_vm6, %v1027_v27, %v1091_v37  ;;  %v2602_v42 = vpop.f32.mrb[12].mxu1  ;;  %v983_v26 = vmax.f32 %v1711_v16, 1e-12 }
 0x148   : > { %2984 = vst [vmem:[#allocation28_spill] sm:$0xff] %v2602_v42  ;;  %v1715_v46 = vpop.eup %1714  ;;  %v1078_v31 = vmax.f32 %v1046_v59, 0.01  ;;  %1728 = vlog2.f32 %v1123_v11  ;;  %v997_v41 = vmax.f32 %v1707_v20, 1e-12  ;;  %v1124_v51 = vsel %vm964_vm7, %v1028_v25, %v1092_v14  ;;  %v2610_v35 = vpop.f32.mrb[13].mxu0 }
 0x149   : > { %v1717_v54 = vpop.eup %1716  ;;  %v1109_v32 = vsel %vm949_vm4, %v1013_v30, %v1077_v28  ;;  %v984_v27 = vmax.f32 %v1713_v44, 1e-12  ;;  %v998_v5 = vmax.f32 %v1709_v19, 1e-12  ;;  %v2612_v37 = vpop.f32.mrb[13].mxu1  ;;  %v1015_v16 = vmin.f32 %v983_v26, 1.0 }
 0x14a   : > { %2985 = vst [vmem:[#allocation29_spill] sm:$0xff] %v2612_v37  ;;  %v1719_v42 = vpop.eup %1718  ;;  %1730 = vlog2.f32 %v1109_v32  ;;  %v1110_v20 = vsel %vm950_vm5, %v1014_v23, %v1078_v31  ;;  %v1047_v59 = vsub.f32 1.0, %v983_v26  ;;  %v1029_v30 = vmin.f32 %v997_v41, 1.0  ;;  %v2619_v44 = vpop.f32.mrb[14].mxu0 }
 0x14b   : > { %v2617_v48 = vpop.eup %1720  ;;  %1732 = vlog2.f32 %v1110_v20  ;;  %v1061_v52 = vsub.f32 1.0, %v997_v41  ;;  %v1016_v25 = vmin.f32 %v984_v27, 1.0  ;;  %2986 = vst [vmem:[#allocation30_spill] sm:$0xff] %v2619_v44  ;;  %v2621_v19 = vpop.f32.mrb[14].mxu1  ;;  %v1048_v14 = vsub.f32 1.0, %v984_v27 }
 0x14c   : > { %2987 = vst [vmem:[#allocation31_spill] sm:$0xff] %v2621_v19  ;;  %v1723_v28 = vpop.eup %1722  ;;  %1734 = vlog2.f32 %v1124_v51  ;;  %v1079_v11 = vmax.f32 %v1047_v59, 0.01  ;;  %v1030_v32 = vmin.f32 %v998_v5, 1.0  ;;  %v2623_v37 = vpop.f32.mrb[15].mxu0  ;;  %v1062_v31 = vsub.f32 1.0, %v998_v5 }
 0x14d   : > { %v2625_v49 = vpop.f32.mrb[15].mxu1  ;;  %v1093_v23 = vmax.f32 %v1061_v52, 0.01  ;;  %v999_v26 = vmax.f32 %v1715_v46, 1e-12  ;;  %1736 = vrcp.f32 %v2571_v39  ;;  %vm2989_vm2 = vcmp.gt.f32.partialorder %v2327_v62, %v2272_v45 }
 0x14e   : > { %2988 = vst [vmem:[#allocation32_spill] sm:$0xff] %v2625_v49  ;;  %v1111_v41 = vsel %vm951_vm8, %v1015_v16, %v1079_v11  ;;  %v1080_v20 = vmax.f32 %v1048_v14, 0.01  ;;  %v1000_v19 = vmax.f32 %v1717_v54, 1e-12  ;;  %vm2990_vm3 = vcmp.gt.f32.partialorder %v2306_v57, %v2272_v45 }
 0x14f   : > { %v985_v44 = vmax.f32 %v1719_v42, 1e-12  ;;  %1738 = vlog2.f32 %v1111_v41  ;;  %v1125_v51 = vsel %vm965_vm12, %v1029_v30, %v1093_v23  ;;  %v1094_v27 = vmax.f32 %v1062_v31, 0.01  ;;  %v1725_v49 = vpop.eup %1724 }
 0x150   : > { %v1031_v59 = vmin.f32 %v999_v26, 1.0  ;;  %1740 = vlog2.f32 %v1125_v51  ;;  %v1112_v39 = vsel %vm952_vm9, %v1016_v25, %v1080_v20  ;;  %v1063_v46 = vsub.f32 1.0, %v999_v26 }
 0x151   : > { %v1032_v5 = vmin.f32 %v1000_v19, 1.0  ;;  %v1727_v50 = vpop.eup %1726  ;;  %v1172_v16 = vmul.f32 0.6931472, %v1725_v49  ;;  %1742 = vlog2.f32 %v1112_v39  ;;  %v1126_v54 = vsel %vm2989_vm2, %v1030_v32, %v1094_v27 }
 0x152   : > { %v1064_v42 = vsub.f32 1.0, %v1000_v19  ;;  %v1729_v61 = vpop.eup %1728  ;;  %v1174_v30 = vmul.f32 0.6931472, %v1727_v50  ;;  %1744 = vlog2.f32 %v1126_v54  ;;  %v1095_v52 = vmax.f32 %v1063_v46, 0.01 }
 0x153   : > { %v1017_v11 = vmin.f32 %v985_v44, 1.0  ;;  %v1235_v14 = vmul.f32 %v1172_v16, %v2315_v60  ;;  %v1204_v23 = vmul.f32 0.6931472, %v1729_v61  ;;  %v1049_v25 = vsub.f32 1.0, %v985_v44 }
 0x154   : > { %v1096_v53 = vmax.f32 %v1064_v42, 0.01  ;;  %v1731_v31 = vpop.eup %1730  ;;  %v1236_v26 = vmul.f32 %v1174_v30, %v2347_v1  ;;  %v1127_v49 = vsel %vm2990_vm3, %v1031_v59, %v1095_v52  ;;  %v986_v62 = vmax.f32 %v2617_v48, 1e-12 }
 0x155   : > { %v1001_v19 = vmax.f32 %v1723_v28, 1e-12  ;;  %v1733_v32 = vpop.eup %1732  ;;  %v1176_v41 = vmul.f32 0.6931472, %v1731_v31  ;;  %v2647_v20 = vmul.f32 %v1204_v23, %v2383_v8  ;;  %1746 = vlog2.f32 %v1127_v49 }
 0x156   : > { %vm2991_vm4 = vcmp.gt.f32.partialorder %v2309_v58, %v2272_v45  ;;  %v1735_v44 = vpop.eup %1734  ;;  %v1178_v51 = vmul.f32 0.6931472, %v1733_v32  ;;  %v1081_v1 = vmax.f32 %v1049_v25, 0.01  ;;  %v1018_v27 = vmin.f32 %v986_v62, 1.0 }
 0x157   : > { %v1128_v60 = vsel %vm2991_vm4, %v1032_v5, %v1096_v53  ;;  %v1737_v57 = vpop.eup %1736  ;;  %v1237_v59 = vmul.f32 %v1176_v41, %v2353_v2  ;;  %v1206_v48 = vmul.f32 0.6931472, %v1735_v44  ;;  %v1050_v28 = vsub.f32 1.0, %v986_v62 }
 0x158   : > { %1748 = vlog2.f32 %v1128_v60  ;;  %v1033_v39 = vmin.f32 %v1001_v19, 1.0  ;;  %v1238_v46 = vmul.f32 %v1178_v51, %v2368_v6  ;;  %vm2992_vm5 = vcmp.gt.f32.partialorder %v2330_v63, %v2272_v45 }
 0x159   : > { %v1113_v8 = vsel %vm2992_vm5, %v1017_v11, %v1081_v1  ;;  %v1065_v50 = vsub.f32 1.0, %v1001_v19  ;;  %v1002_v58 = vmax.f32 %v1737_v57, 1e-12  ;;  %v1739_v5 = vpop.eup %1738  ;;  %v1267_v16 = vadd.f32 %v1237_v59, %v1235_v14 }
 0x15a   : > { %v2658_v54 = vmul.f32 %v1206_v48, %v2389_v9  ;;  %1750 = vlog2.f32 %v1113_v8  ;;  %v1082_v42 = vmax.f32 %v1050_v28, 0.01  ;;  %v1741_v61 = vpop.eup %1740  ;;  %v1268_v2 = vadd.f32 %v1238_v46, %v1236_v26  ;;  %v2996_v48 = vld [vmem:[#allocation6_spill] sm:$0xff] }
 0x15b   : > { %v1180_v30 = vmul.f32 0.6931472, %v1739_v5  ;;  %v1097_v52 = vmax.f32 %v1065_v50, 0.01  ;;  %v1034_v23 = vmin.f32 %v1002_v58, 1.0  ;;  %v1743_v53 = vpop.eup %1742  ;;  %vm2993_vm6 = vcmp.gt.f32.partialorder %v2341_v0, %v2272_v45  ;;  %v2999_v5 = vld [vmem:[#allocation29_spill] sm:$0xff] }
 0x15c   : > { %v1208_v6 = vmul.f32 0.6931472, %v1741_v61  ;;  %v1114_v63 = vsel %vm2993_vm6, %v1018_v27, %v1082_v42  ;;  %v1066_v11 = vsub.f32 1.0, %v1002_v58  ;;  %v857_v14 = vadd.f32 %v2299_v55, %v2574_v24  ;;  %v1745_v25 = vpop.eup %1744  ;;  %v2998_v58 = vld [vmem:[#allocation9_spill] sm:$0xff] }
 0x15d   : > { %v1239_v9 = vmul.f32 %v1180_v30, %v2395_v10  ;;  %v1182_v31 = vmul.f32 0.6931472, %v1743_v53  ;;  %1752 = vlog2.f32 %v1114_v63  ;;  %vm2994_vm7 = vcmp.gt.f32.partialorder %v2360_v3, %v2272_v45  ;;  %v3000_v30 = vld [vmem:[#allocation7_spill] sm:$0xff] }
 0x15e   : > { %v1129_v26 = vsel %vm2994_vm7, %v1033_v39, %v1097_v52  ;;  %v2670_v49 = vmul.f32 %v1208_v6, %v2403_v12  ;;  %v1210_v62 = vmul.f32 0.6931472, %v1745_v25  ;;  %v1098_v0 = vmax.f32 %v1066_v11, 0.01  ;;  %v3001_v52 = vld [vmem:[#allocation30_spill] sm:$0xff] }
 0x15f   : > { %1754 = vlog2.f32 %v1129_v26  ;;  %v1269_v19 = vadd.f32 %v1267_v16, %v1239_v9  ;;  %v1240_v32 = vmul.f32 %v1182_v31, %v2409_v4  ;;  %v873_v24 = vadd.f32 %v2299_v55, %v2577_v29  ;;  %v1747_v10 = vpop.eup %1746 }
 0x160   : > { %1756 = vrcp.f32 %v857_v14  ;;  %v2676_v41 = vmul.f32 %v1210_v62, %v2415_v13  ;;  %vm2995_vm8 = vcmp.gt.f32.partialorder %v2377_v7, %v2272_v45  ;;  %v769_v12 = vadd.f32 %v2579_v38, %v2264_v40  ;;  %v519_v13 = vpop.permute.xlu1 %518  ;;  %v3002_v14 = vld [vmem:[#allocation11_spill] sm:$0xff]  ;;  %v3003_v62 = vld [vmem:[#allocation12_spill] sm:$0xff] }
 0x161   : > { %v1130_v3 = vsel %vm2995_vm8, %v1034_v23, %v1098_v0  ;;  %v817_v60 = vadd.f32 %v2581_v21, %v2559_v15  ;;  %v1270_v4 = vadd.f32 %v1268_v2, %v1240_v32  ;;  %v1212_v51 = vmul.f32 0.6931472, %v1747_v10 }
 0x162   : > { %v1749_v44 = vpop.eup %1748  ;;  %1758 = vlog2.f32 %v1130_v3  ;;  %v773_v29 = vadd.f32 %v2586_v33, %v2277_v47  ;;  %v858_v27 = vadd.f32 %v2303_v56, %v769_v12  ;;  %v821_v15 = vadd.f32 %v2588_v43, %v519_v13 }
 0x163   : > { %v1214_v1 = vmul.f32 0.6931472, %v1749_v44  ;;  %1760 = vrcp.f32 %v873_v24  ;;  %v874_v7 = vadd.f32 %v2303_v56, %v817_v60  ;;  %v2690_v57 = vmul.f32 %v1212_v51, %v2426_v17  ;;  %v524_v17 = vpop.permute.xlu0 %523 }
 0x164   : > { %v859_v40 = vadd.f32 %v2299_v55, %v773_v29  ;;  %v775_v38 = vadd.f32 %v2593_v34, %v2277_v47  ;;  %v1751_v21 = vpop.eup %1750  ;;  %1762 = vrcp.f32 %v858_v27  ;;  %v823_v59 = vadd.f32 %v2595_v22, %v519_v13  ;;  %v529_v9 = vpop.permute.xlu1 %528  ;;  %v3005_v27 = vld [vmem:[#allocation15_spill] sm:$0xff] }
 0x165   : > { %v2697_v33 = vmul.f32 %v1214_v1, %v2432_v18  ;;  %v779_v28 = vadd.f32 %v2600_v36, %v2996_v48  ;;  %v1184_v39 = vmul.f32 0.6931472, %v1751_v21  ;;  %1764 = vrcp.f32 %v874_v7  ;;  %v2997_v18 = vld [vmem:[#allocation28_spill] sm:$0xff] }
 0x166   : > { %v875_v46 = vadd.f32 %v2299_v55, %v821_v15  ;;  %v860_v43 = vadd.f32 %v2303_v56, %v775_v38  ;;  %1766 = vrcp.f32 %v859_v40  ;;  %v876_v47 = vadd.f32 %v2303_v56, %v823_v59  ;;  %v3006_v15 = vld [vmem:[#allocation32_spill] sm:$0xff] }
 0x167   : > { %v861_v34 = vadd.f32 %v2299_v55, %v779_v28  ;;  %v827_v8 = vadd.f32 %v2997_v18, %v524_v17  ;;  %v1753_v50 = vpop.eup %1752  ;;  %v1241_v22 = vmul.f32 %v1184_v39, %v2998_v58  ;;  %v781_v36 = vadd.f32 %v2610_v35, %v2996_v48  ;;  %v2736_v28 = vld [vmem:[%s2262_s0 + $0xd8] sm:$0xff] }
 0x168   : > { %1768 = vrcp.f32 %v875_v46  ;;  %v829_v16 = vadd.f32 %v2999_v5, %v524_v17  ;;  %v1186_v61 = vmul.f32 0.6931472, %v1753_v50  ;;  %v785_v23 = vadd.f32 %v3001_v52, %v3000_v30  ;;  %v2746_v50 = vld [vmem:[%s2262_s0 + $0x68] sm:$0xff] }
 0x169   : > { %v1755_v42 = vpop.eup %1754  ;;  %1770 = vrcp.f32 %v860_v43  ;;  %v877_v2 = vadd.f32 %v2299_v55, %v827_v8  ;;  %v2714_v6 = vadd.f32 %v1269_v19, %v1241_v22  ;;  %v862_v11 = vadd.f32 %v2303_v56, %v781_v36  ;;  %v3004_v19 = vld [vmem:[#allocation31_spill] sm:$0xff]  ;;  %v2743_v8 = vld [vmem:[%s2262_s0 + $0xe0] sm:$0xff] }
 0x16a   : > { %v1757_v53 = vpop.eup %1756  ;;  %v1216_v63 = vmul.f32 0.6931472, %v1755_v42  ;;  %1772 = vrcp.f32 %v876_v47  ;;  %v1242_v25 = vmul.f32 %v1186_v61, %v3002_v14  ;;  %v878_v31 = vadd.f32 %v2303_v56, %v829_v16 }
 0x16b   : > { %v987_v35 = vmax.f32 %v1757_v53, 1e-12  ;;  %1774 = vrcp.f32 %v861_v34  ;;  %v863_v32 = vadd.f32 %v2299_v55, %v785_v23  ;;  %v833_v24 = vadd.f32 %v3004_v19, %v529_v9 }
 0x16c   : > { %v1759_v26 = vpop.eup %1758  ;;  %v2720_v0 = vmul.f32 %v1216_v63, %v3003_v62  ;;  %1776 = vrcp.f32 %v877_v2  ;;  %v2724_v3 = vadd.f32 %v1270_v4, %v1242_v25  ;;  %v787_v1 = vadd.f32 %v2623_v37, %v3000_v30  ;;  %v3007_v37 = vld [vmem:[#allocation8_spill] sm:$0xff] }
 0x16d   : > { %v1761_v10 = vpop.eup %1760  ;;  %v1218_v12 = vmul.f32 0.6931472, %v1759_v26  ;;  %v1019_v60 = vmin.f32 %v987_v35, 1.0  ;;  %v1051_v44 = vsub.f32 1.0, %v987_v35  ;;  %1778 = vrcp.f32 %v862_v11 }
 0x16e   : > { %v1003_v51 = vmax.f32 %v1761_v10, 1e-12  ;;  %v879_v29 = vadd.f32 %v2299_v55, %v833_v24  ;;  %v1763_v13 = vpop.eup %1762  ;;  %1780 = vrcp.f32 %v878_v31  ;;  %v2733_v4 = vadd.f32 %v3006_v15, %v529_v9  ;;  %v2764_v10 = vld [vmem:[%s2262_s0 + $0xe8] sm:$0xff] }
 0x16f   : > { %v2730_v7 = vmul.f32 %v1218_v12, %v3005_v27  ;;  %v1083_v40 = vmax.f32 %v1051_v44, 0.01  ;;  %v1765_v38 = vpop.eup %1764  ;;  %v988_v48 = vmax.f32 %v1763_v13, 1e-12  ;;  %1782 = vrcp.f32 %v863_v32  ;;  %v2767_v12 = vld [vmem:[%s2262_s0 + $0x70] sm:$0xff] }
 0x170   : > { %v1035_v21 = vmin.f32 %v1003_v51, 1.0  ;;  %v1067_v59 = vsub.f32 1.0, %v1003_v51  ;;  %v1767_v55 = vpop.eup %1766  ;;  %vm3008_vm9 = vcmp.gt.f32.partialorder %v3007_v37, %v2272_v45  ;;  %v1004_v17 = vmax.f32 %v1765_v38, 1e-12 }
 0x171   : > { %v1115_v39 = vsel %vm3008_vm9, %v1019_v60, %v1083_v40  ;;  %1784 = vrcp.f32 %v879_v29  ;;  %v864_v46 = vadd.f32 %v2303_v56, %v787_v1  ;;  %v1020_v34 = vmin.f32 %v988_v48, 1.0 }
 0x172   : > { %v1769_v43 = vpop.eup %1768  ;;  %1786 = vlog2.f32 %v1115_v39  ;;  %v1099_v47 = vmax.f32 %v1067_v59, 0.01  ;;  %v1052_v18 = vsub.f32 1.0, %v988_v48  ;;  %v1036_v22 = vmin.f32 %v1004_v17, 1.0 }
 0x173   : > { %v1771_v58 = vpop.eup %1770  ;;  %v1068_v36 = vsub.f32 1.0, %v1004_v17  ;;  %v989_v5 = vmax.f32 %v1767_v55, 1e-12  ;;  %v1005_v16 = vmax.f32 %v1769_v43, 1e-12  ;;  %vm974_vm12 = vcmp.gt.f32.partialorder %v2736_v28, %v2272_v45 }
 0x174   : > { %v1773_v42 = vpop.eup %1772  ;;  %v1131_v2 = vsel %vm971_vm1, %v1035_v21, %v1099_v47  ;;  %v1084_v30 = vmax.f32 %v1052_v18, 0.01  ;;  %v990_v52 = vmax.f32 %v1771_v58, 1e-12  ;;  %1788 = vrcp.f32 %v864_v46 }
 0x175   : > { %v1775_v23 = vpop.eup %1774  ;;  %1790 = vlog2.f32 %v1131_v2  ;;  %v1100_v53 = vmax.f32 %v1068_v36, 0.01  ;;  %v1021_v63 = vmin.f32 %v989_v5, 1.0  ;;  %v1053_v11 = vsub.f32 1.0, %v989_v5  ;;  %v2786_v5 = vld [vmem:[%s2262_s0 + $0x78] sm:$0xff] }
 0x176   : > { %vm975_vm2 = vcmp.gt.f32.partialorder %v2743_v8, %v2272_v45  ;;  %v1777_v14 = vpop.eup %1776  ;;  %v1116_v35 = vsel %vm956_vm0, %v1020_v34, %v1084_v30  ;;  %v1037_v9 = vmin.f32 %v1005_v16, 1.0  ;;  %v1069_v31 = vsub.f32 1.0, %v1005_v16  ;;  %v2783_v34 = vld [vmem:[%s2262_s0 + $0xf0] sm:$0xff] }
 0x177   : > { %v1022_v26 = vmin.f32 %v990_v52, 1.0  ;;  %vm960_vm1 = vcmp.gt.f32.partialorder %v2746_v50, %v2272_v45  ;;  %1792 = vlog2.f32 %v1116_v35  ;;  %v1132_v32 = vsel %vm972_vm14, %v1036_v22, %v1100_v53  ;;  %v1779_v60 = vpop.eup %1778  ;;  %v3023_v35 = vld [vmem:[#allocation27_spill] sm:$0xff] }
 0x178   : > { %v1085_v19 = vmax.f32 %v1053_v11, 0.01  ;;  %v1054_v24 = vsub.f32 1.0, %v990_v52  ;;  %1794 = vlog2.f32 %v1132_v32  ;;  %v1101_v44 = vmax.f32 %v1069_v31, 0.01  ;;  %v1781_v1 = vpop.eup %1780 }
 0x179   : > { %v1006_v51 = vmax.f32 %v1773_v42, 1e-12  ;;  %v991_v29 = vmax.f32 %v1775_v23, 1e-12  ;;  %v1007_v15 = vmax.f32 %v1777_v14, 1e-12  ;;  %v1783_v21 = vpop.eup %1782  ;;  %vm976_vm14 = vcmp.gt.f32.partialorder %v2764_v10, %v2272_v45 }
 0x17a   : > { %v1117_v27 = vsel %vm957_vm15, %v1021_v63, %v1085_v19  ;;  %v1086_v40 = vmax.f32 %v1054_v24, 0.01  ;;  %v992_v38 = vmax.f32 %v1779_v60, 1e-12  ;;  %v1133_v48 = vsel %vm973_vm11, %v1037_v9, %v1101_v44  ;;  %v3015_v14 = vld [vmem:[#allocation17_spill] sm:$0xff] }
 0x17b   : > { %1796 = vlog2.f32 %v1117_v27  ;;  %v1038_v55 = vmin.f32 %v1006_v51, 1.0  ;;  %v1070_v37 = vsub.f32 1.0, %v1006_v51  ;;  %v1785_v39 = vpop.eup %1784  ;;  %v1023_v43 = vmin.f32 %v991_v29, 1.0 }
 0x17c   : > { %1798 = vlog2.f32 %v1133_v48  ;;  %v1118_v46 = vsel %vm958_vm10, %v1022_v26, %v1086_v40  ;;  %v1055_v47 = vsub.f32 1.0, %v991_v29  ;;  %vm961_vm15 = vcmp.gt.f32.partialorder %v2767_v12, %v2272_v45  ;;  %v1787_v18 = vpop.eup %1786 }
 0x17d   : > { %1800 = vlog2.f32 %v1118_v46  ;;  %v1102_v58 = vmax.f32 %v1070_v37, 0.01  ;;  %v1039_v22 = vmin.f32 %v1007_v15, 1.0  ;;  %v1071_v36 = vsub.f32 1.0, %v1007_v15  ;;  %v3018_v37 = vld [vmem:[#allocation21_spill] sm:$0xff] }
 0x17e   : > { %v1188_v16 = vmul.f32 0.6931472, %v1787_v18  ;;  %v1087_v42 = vmax.f32 %v1055_v47, 0.01  ;;  %v1024_v61 = vmin.f32 %v992_v38, 1.0  ;;  %v1056_v2 = vsub.f32 1.0, %v992_v38  ;;  %v1789_v30 = vpop.eup %1788 }
 0x17f   : > { %v1134_v52 = vsel %vm974_vm12, %v1038_v55, %v1102_v58  ;;  %v1103_v23 = vmax.f32 %v1071_v36, 0.01  ;;  %v1008_v53 = vmax.f32 %v1781_v1, 1e-12  ;;  %v993_v63 = vmax.f32 %v1783_v21, 1e-12  ;;  %v1791_v11 = vpop.eup %1790 }
 0x180   : > { %vm977_vm10 = vcmp.gt.f32.partialorder %v2783_v34, %v2272_v45  ;;  %v1243_v25 = vmul.f32 %v1188_v16, %v3015_v14  ;;  %1802 = vlog2.f32 %v1134_v52  ;;  %v1119_v9 = vsel %vm959_vm13, %v1023_v43, %v1087_v42  ;;  %v3017_v21 = vld [vmem:[#allocation22_spill] sm:$0xff]  ;;  %v3019_v36 = vld [vmem:[#allocation24_spill] sm:$0xff] }
 0x181   : > { %v1088_v31 = vmax.f32 %v1056_v2, 0.01  ;;  %v1220_v26 = vmul.f32 0.6931472, %v1791_v11  ;;  %1804 = vlog2.f32 %v1119_v9  ;;  %v1135_v62 = vsel %vm975_vm2, %v1039_v22, %v1103_v23  ;;  %v1793_v19 = vpop.eup %1792  ;;  %v3021_v23 = vld [vmem:[#allocation23_spill] sm:$0xff]  ;;  %v3022_v11 = vld [vmem:[#allocation25_spill] sm:$0xff] }
 0x182   : > { %v1040_v32 = vmin.f32 %v1008_v53, 1.0  ;;  %v1273_v24 = vadd.f32 %v2714_v6, %v1243_v25  ;;  %1806 = vlog2.f32 %v1135_v62  ;;  %v1072_v44 = vsub.f32 1.0, %v1008_v53  ;;  %v1795_v51 = vpop.eup %1794 }
 0x183   : > { %v1120_v60 = vsel %vm960_vm1, %v1024_v61, %v1088_v31  ;;  %vm962_vm11 = vcmp.gt.f32.partialorder %v2786_v5, %v2272_v45  ;;  %v1190_v29 = vmul.f32 0.6931472, %v1793_v19  ;;  %v1025_v1 = vmin.f32 %v993_v63, 1.0 }
 0x184   : > { %1808 = vlog2.f32 %v1120_v60  ;;  %v1057_v13 = vsub.f32 1.0, %v993_v63  ;;  %v1222_v27 = vmul.f32 0.6931472, %v1795_v51  ;;  %v1104_v40 = vmax.f32 %v1072_v44, 0.01 }
 0x185   : > { %v1009_v15 = vmax.f32 %v1785_v39, 1e-12  ;;  %v880_v6 = vadd.f32 %v2303_v56, %v2733_v4  ;;  %v1797_v38 = vpop.eup %1796  ;;  %v1244_v59 = vmul.f32 %v1190_v29, %v3017_v21  ;;  %v994_v55 = vmax.f32 %v1789_v30, 1e-12 }
 0x186   : > { %v1089_v48 = vmax.f32 %v1057_v13, 0.01  ;;  %v2810_v17 = vmul.f32 %v1220_v26, %v3018_v37  ;;  %v1799_v46 = vpop.eup %1798  ;;  %v1192_v43 = vmul.f32 0.6931472, %v1797_v38  ;;  %v1136_v47 = vsel %vm976_vm14, %v1040_v32, %v1104_v40 }
 0x187   : > { %v1041_v18 = vmin.f32 %v1009_v15, 1.0  ;;  %v1073_v58 = vsub.f32 1.0, %v1009_v15  ;;  %v1801_v39 = vpop.eup %1800  ;;  %v1274_v22 = vadd.f32 %v2724_v3, %v1244_v59  ;;  %v1224_v56 = vmul.f32 0.6931472, %v1799_v46 }
 0x188   : > { %1810 = vlog2.f32 %v1136_v47  ;;  %v1121_v4 = vsel %vm961_vm15, %v1025_v1, %v1089_v48  ;;  %v1245_v16 = vmul.f32 %v1192_v43, %v3019_v36  ;;  %v1194_v42 = vmul.f32 0.6931472, %v1801_v39 }
 0x189   : > { %1812 = vlog2.f32 %v1121_v4  ;;  %v1105_v61 = vmax.f32 %v1073_v58, 0.01  ;;  %v1058_v2 = vsub.f32 1.0, %v994_v55  ;;  %v3020_v30 = vmov 7.0  }
 0x18a   : > { %1814 = vrcp.f32 %v880_v6  ;;  %v1166_v52 = vsel %vm974_vm12, 20.0, %v3020_v30  ;;  %v2825_v3 = vmul.f32 %v1222_v27, %v3021_v23  ;;  %v1803_v53 = vpop.eup %1802  ;;  %v1275_v63 = vadd.f32 %v1273_v24, %v1245_v16  ;;  %v3024_v27 = vld [vmem:[#allocation26_spill] sm:$0xff] }
 0x18b   : > { %v1246_v14 = vmul.f32 %v1194_v42, %v3022_v11  ;;  %v1137_v25 = vsel %vm977_vm10, %v1041_v18, %v1105_v61  ;;  %v1261_v9 = vmul.f32 %v1224_v56, %v3023_v35  ;;  %v1805_v31 = vpop.eup %1804  ;;  %v1226_v26 = vmul.f32 0.6931472, %v1803_v53  ;;  %v945_v18 = vld [vmem:[%s2262_s0 + $0xf8] sm:$0xff] }
 0x18c   : > { %v1026_v62 = vmin.f32 %v994_v55, 1.0  ;;  %v1090_v32 = vmax.f32 %v1058_v2, 0.01  ;;  %1816 = vlog2.f32 %v1137_v25  ;;  %v1807_v28 = vpop.eup %1806  ;;  %v1196_v60 = vmul.f32 0.6931472, %v1805_v31 }
 0x18d   : > { %v1276_v19 = vadd.f32 %v1274_v22, %v1246_v14  ;;  %v1167_v24 = vsel %vm975_vm2, 20.0, %v3020_v30  ;;  %v1152_v51 = vsel %vm960_vm1, 20.0, %v3020_v30  ;;  %v1228_v1 = vmul.f32 0.6931472, %v1807_v28 }
 0x18e   : > { %v1809_v44 = vpop.eup %1808  ;;  %v1122_v29 = vsel %vm962_vm11, %v1026_v62, %v1090_v32  ;;  %v1262_v13 = vmul.f32 %v1226_v26, %v1166_v52  ;;  %v1247_v40 = vmul.f32 %v1196_v60, %v3024_v27  ;;  %v1168_v50 = vsel %vm976_vm14, 20.0, %v3020_v30 }
 0x18f   : > { %v1198_v15 = vmul.f32 0.6931472, %v1809_v44  ;;  %1818 = vlog2.f32 %v1122_v29  ;;  %v1263_v6 = vmul.f32 %v1228_v1, %v1167_v24  ;;  %v1153_v55 = vsel %vm961_vm15, 20.0, %v3020_v30 }
 0x190   : > { %v1277_v8 = vadd.f32 %v1275_v63, %v1247_v40  ;;  %v1169_v10 = vsel %vm977_vm10, 20.0, %v3020_v30  ;;  %vm978_vm13 = vcmp.gt.f32.partialorder %v945_v18, %v2272_v45  ;;  %v1154_v16 = vsel %vm962_vm11, 20.0, %v3020_v30 }
 0x191   : > { %v1248_v38 = vmul.f32 %v1198_v15, %v1152_v51 }
 0x192   : > { %v1811_v21 = vpop.eup %1810 }
 0x193   : > { %v1813_v59 = vpop.eup %1812  ;;  %v1278_v48 = vadd.f32 %v1276_v19, %v1248_v38  ;;  %v1230_v37 = vmul.f32 0.6931472, %v1811_v21 }
 0x194   : > { %v1815_v46 = vpop.eup %1814  ;;  %v1200_v43 = vmul.f32 0.6931472, %v1813_v59 }
 0x195   : > { %v1010_v47 = vmax.f32 %v1815_v46, 1e-12  ;;  %v1264_v58 = vmul.f32 %v1230_v37, %v1168_v50 }
 0x196   : > { %v1817_v39 = vpop.eup %1816  ;;  %v1249_v22 = vmul.f32 %v1200_v43, %v1153_v55 }
 0x197   : > { %v1074_v56 = vsub.f32 1.0, %v1010_v47  ;;  %v1232_v4 = vmul.f32 0.6931472, %v1817_v39  ;;  %v1042_v42 = vmin.f32 %v1010_v47, 1.0 }
 0x198   : > { %v1279_v36 = vadd.f32 %v1277_v8, %v1249_v22 }
 0x199   : > { %v1819_v12 = vpop.eup %1818  ;;  %v1106_v61 = vmax.f32 %v1074_v56, 0.01  ;;  %v1265_v2 = vmul.f32 %v1232_v4, %v1169_v10 }
 0x19a   : > { %v1281_v52 = vadd.f32 %v1279_v36, %v2647_v20  ;;  %v1202_v23 = vmul.f32 0.6931472, %v1819_v12 }
 0x19b   : > { %v1138_v34 = vsel %vm978_vm13, %v1042_v42, %v1106_v61 }
 0x19c   : > { %v1250_v53 = vmul.f32 %v1202_v23, %v1154_v16  ;;  %1820 = vlog2.f32 %v1138_v34  ;;  %v1283_v63 = vadd.f32 %v1281_v52, %v2670_v49  ;;  %v1170_v49 = vsel %vm978_vm13, 20.0, %v3020_v30 }
 0x19e   : > { %v1280_v11 = vadd.f32 %v1278_v48, %v1250_v53  ;;  %v1285_v14 = vadd.f32 %v1283_v63, %v2690_v57 }
 0x1a0   : > { %v1282_v5 = vadd.f32 %v1280_v11, %v2658_v54  ;;  %v1287_v25 = vadd.f32 %v1285_v14, %v2720_v0 }
 0x1a2   : > { %v1284_v35 = vadd.f32 %v1282_v5, %v2676_v41  ;;  %v1289_v20 = vadd.f32 %v1287_v25, %v2810_v17 }
 0x1a4   : > { %v1286_v31 = vadd.f32 %v1284_v35, %v2697_v33  ;;  %v1291_v26 = vadd.f32 %v1289_v20, %v1261_v9 }
 0x1a6   : > { %v1821_v62 = vpop.eup %1820  ;;  %v1288_v57 = vadd.f32 %v1286_v31, %v2730_v7  ;;  %v1293_v32 = vadd.f32 %v1291_v26, %v1263_v6 }
 0x1a7   : > { %v1234_v54 = vmul.f32 0.6931472, %v1821_v62 }
 0x1a8   : > { %v1290_v0 = vadd.f32 %v1288_v57, %v2825_v3  ;;  %v1295_v41 = vadd.f32 %v1293_v32, %v1265_v2 }
 0x1a9   : > { %v1266_v28 = vmul.f32 %v1234_v54, %v1170_v49 }
 0x1aa   : > { %v1292_v17 = vadd.f32 %v1290_v0, %v1262_v13 }
 0x1ac   : > { %v1294_v19 = vadd.f32 %v1292_v17, %v1264_v58 }
 0x1ae   : > { %v1296_v33 = vadd.f32 %v1294_v19, %v1266_v28 }
 0x1b0   : > { %v1297_v9 = vadd.f32 %v1296_v33, %v1295_v41 }
 0x1b2   : > { %1298 = vst [vmem:[%s335_s12] sm:$0xff] %v1297_v9 }
 0x1b3   : > { %1835 = shalt.err (!%p1832_p5)
}
 0x1b4   : > { %s1836_s0 = scalar_lea.hbm %s2882_s19, 128  ;;  %s1840_s15 = scalar_lea.hbm %s2935_s6, 256 }
 0x1b5   : > { %p1837_p6 = scmp.ne.s32.totalorder %s2882_s19, %s1836_s0  ;;  %p1841_p10 = scmp.lt.u32.totalorder %s2882_s19, %s2935_s6 }
 0x1b6   : > { %p1842_p11 = scmp.lt.u32.totalorder %s1840_s15, %s1836_s0  ;;  %p1844_p13 = scmp.lt.u32.totalorder %s1836_s0, %s2882_s19 }
 0x1b7   : > { %p1838_p7 = pnand %p1837_p6, %p1983_p4 }
 0x1b8   : > { %p1843_p12 = por %p1842_p11, %p1841_p10 }
 0x1b9   : > { %p1839_p9 = pneg %p1838_p7 }
 0x1ba   : > { %p1845_p0 = por %p1844_p13, %p1843_p12 }
 0x1bc   : > { %p1846_p1 = pnand %p1845_p0, %p1839_p9 }
 0x1be   : > { %1849 = shalt.err (!%p1846_p1)
}
 0x1bf   : > { %1635 = dma.vmem_to_hbm [thread:$0]  (%p1983_p4), %s2884_s13, 128, %s2882_s19, %s1300_s22  }
 0x1c0 PF: > { %p1641_p2 = scmp.ge.s32.totalorder %s1900_s28, 2  ;;  %s1326_s12 = sand.u32 1, %s1880_s23  }
 0x1c1   : > { %s1327_s16 = scalar_lea.sflag [#allocation4], %s1326_s12 }
 0x1c2   : > { %p1638_p3 = pnand %p1641_p2, %p1990_p8 }
 0x1c4   : > { %1875 = dma.done.wait (!%p1638_p3), %s1327_s16, 128  }
 0x1c5   : > { %1877 = vsyncadd (!%p1638_p3), %s1327_s16, 4294967168  ;;  %s20_s28 = sadd.s32 1, %s1900_s28   ;;  %s3025_s23 = smov %s1884_s24 }
 0x1c6   : > { %p17_p5 = scmp.ge.s32.totalorder %s20_s28, 4   ;;  %s3026_s24 = smov %s1888_s25 }
 0x1c7   : > { %s3027_s25 = smov %s1996_s11  ;;  %s3028_s26 = smov %s1896_s27 }
 0x1c8   : > { %s3029_s27 = smov %s3031_s30  ;;  %19 = sbr.rel (!%p17_p5) target bundleno = 6 (0x6), region = 91 }
 0x1cf   :  { %1332 = vsyncpa [#allocation4], 1 }
 0x1d0   :  { %1334 = vsyncpa [#allocation4 + $0x1], 1 }

</bundles_post_ra>
